<compile_context>
chip_gen: v6e
topology: v6e:2x2x1
jax: 0.10.0
libtpu: 0.0.40
codegen_flags: <defaults>
</compile_context>

<pallas_src>
import jax
import jax.numpy as jnp
from jax import lax
from jax.experimental import pallas as pl
from jax.experimental.pallas import tpu as pltpu

NEG_SLOPE = 0.01   # nn.LeakyReLU default negative_slope
BN_EPS = 1e-5      # nn.BatchNorm2d default eps
LANE = 128


def _round_up(x, m):
    return (x + m - 1) // m * m


def _conv_stats_kernel(x00_ref, x01_ref, x10_ref, x11_ref, w_ref, b_ref,
                       y_ref, psum_ref, psq_ref):
    """One image per grid step: conv(3x3,s2) + bias + LeakyReLU, plus per-step
    per-channel sum / sum-of-squares partials for the global BatchNorm."""
    _, hh, wh, cin = x00_ref.shape
    ho, wo = hh - 1, wh - 1
    cpad = w_ref.shape[-1]
    m = ho * wo

    phase_refs = ((x00_ref, x01_ref), (x10_ref, x11_ref))

    acc = jnp.zeros((m, cpad), dtype=jnp.float32)
    for kh in range(3):
        for kw in range(3):
            ph_ref = phase_refs[kh % 2][kw % 2]
            a, b = kh // 2, kw // 2
            tap = ph_ref[0, a:a + ho, b:b + wo, :]          # (ho, wo, cin) bf16
            tap2d = tap.reshape(m, cin)                     # (ho*wo, cin)
            wk = w_ref[kh, kw]                              # (cin, cpad) bf16
            acc = acc + jnp.dot(tap2d, wk,
                                preferred_element_type=jnp.float32)

    y = acc + b_ref[...]                                    # conv bias (1, cpad)
    y = jnp.where(y >= 0, y, NEG_SLOPE * y)                 # LeakyReLU
    y_ref[0] = y                                            # pre-norm activations (f32)
    # single-pass stats: sum and sum of squares (combined in the wrapper)
    psum_ref[0] = jnp.sum(y, axis=0, keepdims=True)
    psq_ref[0] = jnp.sum(y * y, axis=0, keepdims=True)


def _bn_apply_kernel(y_ref, scale_ref, shift_ref, o_ref):
    """Folded BatchNorm affine: one FMA per element, lane-dense tiles."""
    o_ref[...] = (y_ref[...] * scale_ref[...] + shift_ref[...]).astype(o_ref.dtype)


def downsample_conv_block(x_nchw, w, b, gamma, beta):
    """x_nchw: (N, Cin, H, W). Returns (N, Cout, Ho, Wo) matching PyTorch."""
    N, Cin, H, W = x_nchw.shape
    Cout = w.shape[0]
    Ho = (H + 2 - 3) // 2 + 1
    Wo = (W + 2 - 3) // 2 + 1
    Hh, Wh = Ho + 1, Wo + 1
    M = N * Ho * Wo
    Cpad = _round_up(Cout, LANE)
    out_dtype = x_nchw.dtype

    # ---- glue: NCHW -> NHWC (bf16), zero-pad, even/odd phase split ----
    x = jnp.transpose(x_nchw, (0, 2, 3, 1)).astype(jnp.bfloat16)
    x = jnp.pad(x, ((0, 0), (1, 2 * Ho + 1 - H), (1, 2 * Wo + 1 - W), (0, 0)))
    xs = x.reshape(N, Hh, 2, Wh, 2, Cin)
    ph00 = xs[:, :, 0, :, 0, :]          # rows 2i,   cols 2j
    ph01 = xs[:, :, 0, :, 1, :]          # rows 2i,   cols 2j+1
    ph10 = xs[:, :, 1, :, 0, :]          # rows 2i+1, cols 2j
    ph11 = xs[:, :, 1, :, 1, :]          # rows 2i+1, cols 2j+1

    # weights (Cout, Cin, 3, 3) -> (3, 3, Cin, Cpad) bf16; params padded to Cpad
    wk = jnp.transpose(w, (2, 3, 1, 0))
    wk = jnp.pad(wk, ((0, 0), (0, 0), (0, 0), (0, Cpad - Cout))).astype(jnp.bfloat16)
    b_p = jnp.pad(b, (0, Cpad - Cout)).astype(jnp.float32).reshape(1, Cpad)
    g_p = jnp.pad(gamma, (0, Cpad - Cout)).astype(jnp.float32)
    beta_p = jnp.pad(beta, (0, Cpad - Cout)).astype(jnp.float32)

    # ---- pass 1: conv + bias + LeakyReLU + partial BN stats ----
    phase_spec = pl.BlockSpec((1, Hh, Wh, Cin), lambda n: (n, 0, 0, 0))
    flops = 2 * M * 9 * Cin * Cpad
    bytes1 = (4 * N * Hh * Wh * Cin * 2 + 9 * Cin * Cpad * 2
              + M * Cpad * 4 + 2 * N * Cpad * 4 + Cpad * 4)
    y3d, psum, psq = pl.pallas_call(
        _conv_stats_kernel,
        out_shape=(
            jax.ShapeDtypeStruct((N, Ho * Wo, Cpad), jnp.float32),
            jax.ShapeDtypeStruct((N, 1, Cpad), jnp.float32),
            jax.ShapeDtypeStruct((N, 1, Cpad), jnp.float32),
        ),
        grid=(N,),
        in_specs=[
            phase_spec, phase_spec, phase_spec, phase_spec,
            pl.BlockSpec((3, 3, Cin, Cpad), lambda n: (0, 0, 0, 0)),
            pl.BlockSpec((1, Cpad), lambda n: (0, 0)),
        ],
        out_specs=(
            pl.BlockSpec((1, Ho * Wo, Cpad), lambda n: (n, 0, 0)),
            pl.BlockSpec((1, 1, Cpad), lambda n: (n, 0, 0)),
            pl.BlockSpec((1, 1, Cpad), lambda n: (n, 0, 0)),
        ),
        compiler_params=pltpu.CompilerParams(
            dimension_semantics=("parallel",),
            vmem_limit_bytes=64 * 1024 * 1024,
        ),
        cost_estimate=pl.CostEstimate(
            flops=flops, transcendentals=0, bytes_accessed=bytes1),
    )(ph00, ph01, ph10, ph11, wk, b_p)

    # ---- combine partials -> global batch stats -> folded scale/shift ----
    mean = jnp.sum(psum[:, 0, :], axis=0) / M
    var = jnp.maximum(jnp.sum(psq[:, 0, :], axis=0) / M - mean * mean, 0.0)
    scale = g_p * lax.rsqrt(var + BN_EPS)
    shift = beta_p - mean * scale
    scale2d = scale.reshape(1, Cpad)
    shift2d = shift.reshape(1, Cpad)

    # ---- pass 2: normalize (M-tiled, lane-dense, one FMA per element) ----
    y2d = y3d.reshape(M, Cpad)
    TM = M if M <= 1024 else 1024
    out2d = pl.pallas_call(
        _bn_apply_kernel,
        out_shape=jax.ShapeDtypeStruct((M, Cpad), out_dtype),
        grid=(pl.cdiv(M, TM),),
        in_specs=[
            pl.BlockSpec((TM, Cpad), lambda i: (i, 0)),
            pl.BlockSpec((1, Cpad), lambda i: (0, 0)),
            pl.BlockSpec((1, Cpad), lambda i: (0, 0)),
        ],
        out_specs=pl.BlockSpec((TM, Cpad), lambda i: (i, 0)),
        compiler_params=pltpu.CompilerParams(
            dimension_semantics=("parallel",),
            vmem_limit_bytes=64 * 1024 * 1024,
        ),
        cost_estimate=pl.CostEstimate(
            flops=2 * M * Cpad, transcendentals=0,
            bytes_accessed=M * Cpad * 4 + M * Cpad * 4 + 2 * Cpad * 4),
    )(y2d, scale2d, shift2d)

    out = out2d[:, :Cout].reshape(N, Ho, Wo, Cout)
    return jnp.transpose(out, (0, 3, 1, 2))           # back to NCHW


def _reference(x, w, b, gamma, beta):
    # plain-JAX f32 reference of the PyTorch forward (conv -> leaky_relu -> BN(train))
    y = lax.conv_general_dilated(
        x, w, window_strides=(2, 2), padding=((1, 1), (1, 1)),
        dimension_numbers=('NCHW', 'OIHW', 'NCHW'))
    y = y + b.reshape(1, -1, 1, 1)
    y = jnp.where(y >= 0, y, NEG_SLOPE * y)
    mean = jnp.mean(y, axis=(0, 2, 3), keepdims=True)
    var = jnp.mean((y - mean) ** 2, axis=(0, 2, 3), keepdims=True)
    y = (y - mean) / jnp.sqrt(var + BN_EPS)
    return y * gamma.reshape(1, -1, 1, 1) + beta.reshape(1, -1, 1, 1)


if __name__ == "__main__":
    key = jax.random.PRNGKey(0)
    k_x, k_w, k_b = jax.random.split(key, 3)

    N, Cin, H, W = 2, 4, 16, 16
    Cout = 8

    x = jax.random.normal(k_x, (N, Cin, H, W), dtype=jnp.float32)
    w = jax.random.normal(k_w, (Cout, Cin, 3, 3), dtype=jnp.float32) * 0.1
    b = jax.random.normal(k_b, (Cout,), dtype=jnp.float32) * 0.1
    gamma = jnp.ones((Cout,), dtype=jnp.float32)   # BatchNorm2d weight init
    beta = jnp.zeros((Cout,), dtype=jnp.float32)   # BatchNorm2d bias init

    out = downsample_conv_block(x, w, b, gamma, beta)
    out = jax.block_until_ready(out)

    ref = _reference(x, w, b, gamma, beta)
    assert out.shape == (N, Cout, H // 2, W // 2), out.shape
    max_err = float(jnp.max(jnp.abs(out - ref)))
    # bf16 matmul inputs (f32 accumulation) -> loosened tolerance vs f32 reference
    assert jnp.allclose(out, ref, rtol=2e-2, atol=2e-2), max_err

    print("KERNEL_OK")
</pallas_src>

<mosaic_0001>
module attributes {stable_mosaic.version = 11 : i64} {
  func.func @_conv_stats_kernel(%arg0: i32, %arg1: memref<1x9x9x4xbf16, #tpu.memory_space<vmem>>, %arg2: memref<1x9x9x4xbf16, #tpu.memory_space<vmem>>, %arg3: memref<1x9x9x4xbf16, #tpu.memory_space<vmem>>, %arg4: memref<1x9x9x4xbf16, #tpu.memory_space<vmem>>, %arg5: memref<3x3x4x128xbf16, #tpu.memory_space<vmem>>, %arg6: memref<1x128xf32, #tpu.memory_space<vmem>>, %arg7: memref<1x64x128xf32, #tpu.memory_space<vmem>>, %arg8: memref<1x1x128xf32, #tpu.memory_space<vmem>>, %arg9: memref<1x1x128xf32, #tpu.memory_space<vmem>>) attributes {dimension_semantics = [#tpu.dimension_semantics<parallel>], iteration_bounds = array<i64: 2>, scalar_prefetch = 0 : i64, scratch_operands = 0 : i64, tpu.core_type = #tpu.core_type<tc>, window_params = [{transform_indices = @transform_0, window_bounds = array<i64: 1, 9, 9, 4>}, {transform_indices = @transform_1, window_bounds = array<i64: 1, 9, 9, 4>}, {transform_indices = @transform_2, window_bounds = array<i64: 1, 9, 9, 4>}, {transform_indices = @transform_3, window_bounds = array<i64: 1, 9, 9, 4>}, {pipeline_mode = #tpu.pipeline_mode<synchronous>, transform_indices = @transform_4, window_bounds = array<i64: 3, 3, 4, 128>}, {pipeline_mode = #tpu.pipeline_mode<synchronous>, transform_indices = @transform_5, window_bounds = array<i64: 1, 128>}, {transform_indices = @transform_6, window_bounds = array<i64: 1, 64, 128>}, {transform_indices = @transform_7, window_bounds = array<i64: 1, 1, 128>}, {transform_indices = @transform_8, window_bounds = array<i64: 1, 1, 128>}]} {
    %cst = arith.constant 0.000000e+00 : f32
    %0 = vector.broadcast %cst : f32 to vector<64x128xf32>
    %c0 = arith.constant 0 : index
    %c0_0 = arith.constant 0 : index
    %c0_1 = arith.constant 0 : index
    %c0_2 = arith.constant 0 : index
    %1 = vector.load %arg1[%c0, %c0_0, %c0_1, %c0_2] : memref<1x9x9x4xbf16, #tpu.memory_space<vmem>>, vector<1x8x8x4xbf16>
    %2 = vector.shape_cast %1 : vector<1x8x8x4xbf16> to vector<8x8x4xbf16>
    %3 = vector.shape_cast %2 : vector<8x8x4xbf16> to vector<64x4xbf16>
    %c0_3 = arith.constant 0 : index
    %c0_4 = arith.constant 0 : index
    %c0_5 = arith.constant 0 : index
    %c0_6 = arith.constant 0 : index
    %4 = vector.load %arg5[%c0_3, %c0_4, %c0_5, %c0_6] : memref<3x3x4x128xbf16, #tpu.memory_space<vmem>>, vector<1x1x4x128xbf16>
    %5 = vector.shape_cast %4 : vector<1x1x4x128xbf16> to vector<4x128xbf16>
    %cst_7 = arith.constant dense<0.000000e+00> : vector<64x128xf32>
    %6 = tpu.matmul %3, %5, %cst_7 {dimension_numbers = #tpu.dot_dimension_numbers<[1], [0], [0], [1], [0, 0, 1, 1], [], []>} : vector<64x4xbf16>, vector<4x128xbf16>, vector<64x128xf32> -> vector<64x128xf32>
    %7 = arith.addf %0, %6 : vector<64x128xf32>
    %c0_8 = arith.constant 0 : index
    %c0_9 = arith.constant 0 : index
    %c0_10 = arith.constant 0 : index
    %c0_11 = arith.constant 0 : index
    %8 = vector.load %arg2[%c0_8, %c0_9, %c0_10, %c0_11] : memref<1x9x9x4xbf16, #tpu.memory_space<vmem>>, vector<1x8x8x4xbf16>
    %9 = vector.shape_cast %8 : vector<1x8x8x4xbf16> to vector<8x8x4xbf16>
    %10 = vector.shape_cast %9 : vector<8x8x4xbf16> to vector<64x4xbf16>
    %c0_12 = arith.constant 0 : index
    %c1 = arith.constant 1 : index
    %c0_13 = arith.constant 0 : index
    %c0_14 = arith.constant 0 : index
    %11 = vector.load %arg5[%c0_12, %c1, %c0_13, %c0_14] : memref<3x3x4x128xbf16, #tpu.memory_space<vmem>>, vector<1x1x4x128xbf16>
    %12 = vector.shape_cast %11 : vector<1x1x4x128xbf16> to vector<4x128xbf16>
    %cst_15 = arith.constant dense<0.000000e+00> : vector<64x128xf32>
    %13 = tpu.matmul %10, %12, %cst_15 {dimension_numbers = #tpu.dot_dimension_numbers<[1], [0], [0], [1], [0, 0, 1, 1], [], []>} : vector<64x4xbf16>, vector<4x128xbf16>, vector<64x128xf32> -> vector<64x128xf32>
    %14 = arith.addf %7, %13 : vector<64x128xf32>
    %c0_16 = arith.constant 0 : index
    %c0_17 = arith.constant 0 : index
    %c1_18 = arith.constant 1 : index
    %c0_19 = arith.constant 0 : index
    %15 = vector.load %arg1[%c0_16, %c0_17, %c1_18, %c0_19] : memref<1x9x9x4xbf16, #tpu.memory_space<vmem>>, vector<1x8x8x4xbf16>
    %16 = vector.shape_cast %15 : vector<1x8x8x4xbf16> to vector<8x8x4xbf16>
    %17 = vector.shape_cast %16 : vector<8x8x4xbf16> to vector<64x4xbf16>
    %c0_20 = arith.constant 0 : index
    %c2 = arith.constant 2 : index
    %c0_21 = arith.constant 0 : index
    %c0_22 = arith.constant 0 : index
    %18 = vector.load %arg5[%c0_20, %c2, %c0_21, %c0_22] : memref<3x3x4x128xbf16, #tpu.memory_space<vmem>>, vector<1x1x4x128xbf16>
    %19 = vector.shape_cast %18 : vector<1x1x4x128xbf16> to vector<4x128xbf16>
    %cst_23 = arith.constant dense<0.000000e+00> : vector<64x128xf32>
    %20 = tpu.matmul %17, %19, %cst_23 {dimension_numbers = #tpu.dot_dimension_numbers<[1], [0], [0], [1], [0, 0, 1, 1], [], []>} : vector<64x4xbf16>, vector<4x128xbf16>, vector<64x128xf32> -> vector<64x128xf32>
    %21 = arith.addf %14, %20 : vector<64x128xf32>
    %c0_24 = arith.constant 0 : index
    %c0_25 = arith.constant 0 : index
    %c0_26 = arith.constant 0 : index
    %c0_27 = arith.constant 0 : index
    %22 = vector.load %arg3[%c0_24, %c0_25, %c0_26, %c0_27] : memref<1x9x9x4xbf16, #tpu.memory_space<vmem>>, vector<1x8x8x4xbf16>
    %23 = vector.shape_cast %22 : vector<1x8x8x4xbf16> to vector<8x8x4xbf16>
    %24 = vector.shape_cast %23 : vector<8x8x4xbf16> to vector<64x4xbf16>
    %c1_28 = arith.constant 1 : index
    %c0_29 = arith.constant 0 : index
    %c0_30 = arith.constant 0 : index
    %c0_31 = arith.constant 0 : index
    %25 = vector.load %arg5[%c1_28, %c0_29, %c0_30, %c0_31] : memref<3x3x4x128xbf16, #tpu.memory_space<vmem>>, vector<1x1x4x128xbf16>
    %26 = vector.shape_cast %25 : vector<1x1x4x128xbf16> to vector<4x128xbf16>
    %cst_32 = arith.constant dense<0.000000e+00> : vector<64x128xf32>
    %27 = tpu.matmul %24, %26, %cst_32 {dimension_numbers = #tpu.dot_dimension_numbers<[1], [0], [0], [1], [0, 0, 1, 1], [], []>} : vector<64x4xbf16>, vector<4x128xbf16>, vector<64x128xf32> -> vector<64x128xf32>
    %28 = arith.addf %21, %27 : vector<64x128xf32>
    %c0_33 = arith.constant 0 : index
    %c0_34 = arith.constant 0 : index
    %c0_35 = arith.constant 0 : index
    %c0_36 = arith.constant 0 : index
    %29 = vector.load %arg4[%c0_33, %c0_34, %c0_35, %c0_36] : memref<1x9x9x4xbf16, #tpu.memory_space<vmem>>, vector<1x8x8x4xbf16>
    %30 = vector.shape_cast %29 : vector<1x8x8x4xbf16> to vector<8x8x4xbf16>
    %31 = vector.shape_cast %30 : vector<8x8x4xbf16> to vector<64x4xbf16>
    %c1_37 = arith.constant 1 : index
    %c1_38 = arith.constant 1 : index
    %c0_39 = arith.constant 0 : index
    %c0_40 = arith.constant 0 : index
    %32 = vector.load %arg5[%c1_37, %c1_38, %c0_39, %c0_40] : memref<3x3x4x128xbf16, #tpu.memory_space<vmem>>, vector<1x1x4x128xbf16>
    %33 = vector.shape_cast %32 : vector<1x1x4x128xbf16> to vector<4x128xbf16>
    %cst_41 = arith.constant dense<0.000000e+00> : vector<64x128xf32>
    %34 = tpu.matmul %31, %33, %cst_41 {dimension_numbers = #tpu.dot_dimension_numbers<[1], [0], [0], [1], [0, 0, 1, 1], [], []>} : vector<64x4xbf16>, vector<4x128xbf16>, vector<64x128xf32> -> vector<64x128xf32>
    %35 = arith.addf %28, %34 : vector<64x128xf32>
    %c0_42 = arith.constant 0 : index
    %c0_43 = arith.constant 0 : index
    %c1_44 = arith.constant 1 : index
    %c0_45 = arith.constant 0 : index
    %36 = vector.load %arg3[%c0_42, %c0_43, %c1_44, %c0_45] : memref<1x9x9x4xbf16, #tpu.memory_space<vmem>>, vector<1x8x8x4xbf16>
    %37 = vector.shape_cast %36 : vector<1x8x8x4xbf16> to vector<8x8x4xbf16>
    %38 = vector.shape_cast %37 : vector<8x8x4xbf16> to vector<64x4xbf16>
    %c1_46 = arith.constant 1 : index
    %c2_47 = arith.constant 2 : index
    %c0_48 = arith.constant 0 : index
    %c0_49 = arith.constant 0 : index
    %39 = vector.load %arg5[%c1_46, %c2_47, %c0_48, %c0_49] : memref<3x3x4x128xbf16, #tpu.memory_space<vmem>>, vector<1x1x4x128xbf16>
    %40 = vector.shape_cast %39 : vector<1x1x4x128xbf16> to vector<4x128xbf16>
    %cst_50 = arith.constant dense<0.000000e+00> : vector<64x128xf32>
    %41 = tpu.matmul %38, %40, %cst_50 {dimension_numbers = #tpu.dot_dimension_numbers<[1], [0], [0], [1], [0, 0, 1, 1], [], []>} : vector<64x4xbf16>, vector<4x128xbf16>, vector<64x128xf32> -> vector<64x128xf32>
    %42 = arith.addf %35, %41 : vector<64x128xf32>
    %c0_51 = arith.constant 0 : index
    %c1_52 = arith.constant 1 : index
    %c0_53 = arith.constant 0 : index
    %c0_54 = arith.constant 0 : index
    %43 = vector.load %arg1[%c0_51, %c1_52, %c0_53, %c0_54] : memref<1x9x9x4xbf16, #tpu.memory_space<vmem>>, vector<1x8x8x4xbf16>
    %44 = vector.shape_cast %43 : vector<1x8x8x4xbf16> to vector<8x8x4xbf16>
    %45 = vector.shape_cast %44 : vector<8x8x4xbf16> to vector<64x4xbf16>
    %c2_55 = arith.constant 2 : index
    %c0_56 = arith.constant 0 : index
    %c0_57 = arith.constant 0 : index
    %c0_58 = arith.constant 0 : index
    %46 = vector.load %arg5[%c2_55, %c0_56, %c0_57, %c0_58] : memref<3x3x4x128xbf16, #tpu.memory_space<vmem>>, vector<1x1x4x128xbf16>
    %47 = vector.shape_cast %46 : vector<1x1x4x128xbf16> to vector<4x128xbf16>
    %cst_59 = arith.constant dense<0.000000e+00> : vector<64x128xf32>
    %48 = tpu.matmul %45, %47, %cst_59 {dimension_numbers = #tpu.dot_dimension_numbers<[1], [0], [0], [1], [0, 0, 1, 1], [], []>} : vector<64x4xbf16>, vector<4x128xbf16>, vector<64x128xf32> -> vector<64x128xf32>
    %49 = arith.addf %42, %48 : vector<64x128xf32>
    %c0_60 = arith.constant 0 : index
    %c1_61 = arith.constant 1 : index
    %c0_62 = arith.constant 0 : index
    %c0_63 = arith.constant 0 : index
    %50 = vector.load %arg2[%c0_60, %c1_61, %c0_62, %c0_63] : memref<1x9x9x4xbf16, #tpu.memory_space<vmem>>, vector<1x8x8x4xbf16>
    %51 = vector.shape_cast %50 : vector<1x8x8x4xbf16> to vector<8x8x4xbf16>
    %52 = vector.shape_cast %51 : vector<8x8x4xbf16> to vector<64x4xbf16>
    %c2_64 = arith.constant 2 : index
    %c1_65 = arith.constant 1 : index
    %c0_66 = arith.constant 0 : index
    %c0_67 = arith.constant 0 : index
    %53 = vector.load %arg5[%c2_64, %c1_65, %c0_66, %c0_67] : memref<3x3x4x128xbf16, #tpu.memory_space<vmem>>, vector<1x1x4x128xbf16>
    %54 = vector.shape_cast %53 : vector<1x1x4x128xbf16> to vector<4x128xbf16>
    %cst_68 = arith.constant dense<0.000000e+00> : vector<64x128xf32>
    %55 = tpu.matmul %52, %54, %cst_68 {dimension_numbers = #tpu.dot_dimension_numbers<[1], [0], [0], [1], [0, 0, 1, 1], [], []>} : vector<64x4xbf16>, vector<4x128xbf16>, vector<64x128xf32> -> vector<64x128xf32>
    %56 = arith.addf %49, %55 : vector<64x128xf32>
    %c0_69 = arith.constant 0 : index
    %c1_70 = arith.constant 1 : index
    %c1_71 = arith.constant 1 : index
    %c0_72 = arith.constant 0 : index
    %57 = vector.load %arg1[%c0_69, %c1_70, %c1_71, %c0_72] : memref<1x9x9x4xbf16, #tpu.memory_space<vmem>>, vector<1x8x8x4xbf16>
    %58 = vector.shape_cast %57 : vector<1x8x8x4xbf16> to vector<8x8x4xbf16>
    %59 = vector.shape_cast %58 : vector<8x8x4xbf16> to vector<64x4xbf16>
    %c2_73 = arith.constant 2 : index
    %c2_74 = arith.constant 2 : index
    %c0_75 = arith.constant 0 : index
    %c0_76 = arith.constant 0 : index
    %60 = vector.load %arg5[%c2_73, %c2_74, %c0_75, %c0_76] : memref<3x3x4x128xbf16, #tpu.memory_space<vmem>>, vector<1x1x4x128xbf16>
    %61 = vector.shape_cast %60 : vector<1x1x4x128xbf16> to vector<4x128xbf16>
    %cst_77 = arith.constant dense<0.000000e+00> : vector<64x128xf32>
    %62 = tpu.matmul %59, %61, %cst_77 {dimension_numbers = #tpu.dot_dimension_numbers<[1], [0], [0], [1], [0, 0, 1, 1], [], []>} : vector<64x4xbf16>, vector<4x128xbf16>, vector<64x128xf32> -> vector<64x128xf32>
    %63 = arith.addf %56, %62 : vector<64x128xf32>
    %c0_78 = arith.constant 0 : index
    %c0_79 = arith.constant 0 : index
    %64 = vector.load %arg6[%c0_78, %c0_79] : memref<1x128xf32, #tpu.memory_space<vmem>>, vector<1x128xf32>
    %65 = vector.broadcast %64 : vector<1x128xf32> to vector<64x128xf32>
    %66 = arith.addf %63, %65 : vector<64x128xf32>
    %cst_80 = arith.constant 0.000000e+00 : f32
    %67 = vector.broadcast %cst_80 : f32 to vector<64x128xf32>
    %68 = arith.cmpf oge, %66, %67 : vector<64x128xf32>
    %cst_81 = arith.constant 0.00999999977 : f32
    %69 = vector.broadcast %cst_81 : f32 to vector<64x128xf32>
    %70 = arith.mulf %69, %66 : vector<64x128xf32>
    %71 = arith.select %68, %66, %70 : vector<64x128xi1>, vector<64x128xf32>
    %c0_82 = arith.constant 0 : index
    %c0_83 = arith.constant 0 : index
    %c0_84 = arith.constant 0 : index
    %72 = vector.load %arg7[%c0_82, %c0_83, %c0_84] : memref<1x64x128xf32, #tpu.memory_space<vmem>>, vector<1x64x128xf32>
    %73 = vector.shape_cast %72 : vector<1x64x128xf32> to vector<64x128xf32>
    %74 = vector.shape_cast %71 : vector<64x128xf32> to vector<1x64x128xf32>
    tpu.vector_store %arg7[%c0_82, %c0_83, %c0_84], %74 {strides = array<i32>} : memref<1x64x128xf32, #tpu.memory_space<vmem>>, vector<1x64x128xf32>,
    %cst_85 = arith.constant dense<0.000000e+00> : vector<128xf32>
    %75 = vector.multi_reduction <add>, %71, %cst_85 [0] : vector<64x128xf32> to vector<128xf32>
    %76 = vector.shape_cast %75 : vector<128xf32> to vector<1x128xf32>
    %c0_86 = arith.constant 0 : index
    %c0_87 = arith.constant 0 : index
    %c0_88 = arith.constant 0 : index
    %77 = vector.load %arg8[%c0_86, %c0_87, %c0_88] : memref<1x1x128xf32, #tpu.memory_space<vmem>>, vector<1x1x128xf32>
    %78 = vector.shape_cast %77 : vector<1x1x128xf32> to vector<1x128xf32>
    %79 = vector.shape_cast %76 : vector<1x128xf32> to vector<1x1x128xf32>
    tpu.vector_store %arg8[%c0_86, %c0_87, %c0_88], %79 {strides = array<i32>} : memref<1x1x128xf32, #tpu.memory_space<vmem>>, vector<1x1x128xf32>,
    %80 = arith.mulf %71, %71 : vector<64x128xf32>
    %cst_89 = arith.constant dense<0.000000e+00> : vector<128xf32>
    %81 = vector.multi_reduction <add>, %80, %cst_89 [0] : vector<64x128xf32> to vector<128xf32>
    %82 = vector.shape_cast %81 : vector<128xf32> to vector<1x128xf32>
    %c0_90 = arith.constant 0 : index
    %c0_91 = arith.constant 0 : index
    %c0_92 = arith.constant 0 : index
    %83 = vector.load %arg9[%c0_90, %c0_91, %c0_92] : memref<1x1x128xf32, #tpu.memory_space<vmem>>, vector<1x1x128xf32>
    %84 = vector.shape_cast %83 : vector<1x1x128xf32> to vector<1x128xf32>
    %85 = vector.shape_cast %82 : vector<1x128xf32> to vector<1x1x128xf32>
    tpu.vector_store %arg9[%c0_90, %c0_91, %c0_92], %85 {strides = array<i32>} : memref<1x1x128xf32, #tpu.memory_space<vmem>>, vector<1x1x128xf32>,
    return
  }
  func.func @transform_0(%arg0: i32) -> (i32, i32, i32, i32) {
    %c0_i32 = arith.constant 0 : i32
    %c0_i32_0 = arith.constant 0 : i32
    %c0_i32_1 = arith.constant 0 : i32
    %c0_i32_2 = arith.constant 0 : i32
    return %arg0, %c0_i32, %c0_i32_0, %c0_i32_1 : i32, i32, i32, i32
  }
  func.func @transform_1(%arg0: i32) -> (i32, i32, i32, i32) {
    %c0_i32 = arith.constant 0 : i32
    %c0_i32_0 = arith.constant 0 : i32
    %c0_i32_1 = arith.constant 0 : i32
    %c0_i32_2 = arith.constant 0 : i32
    return %arg0, %c0_i32, %c0_i32_0, %c0_i32_1 : i32, i32, i32, i32
  }
  func.func @transform_2(%arg0: i32) -> (i32, i32, i32, i32) {
    %c0_i32 = arith.constant 0 : i32
    %c0_i32_0 = arith.constant 0 : i32
    %c0_i32_1 = arith.constant 0 : i32
    %c0_i32_2 = arith.constant 0 : i32
    return %arg0, %c0_i32, %c0_i32_0, %c0_i32_1 : i32, i32, i32, i32
  }
  func.func @transform_3(%arg0: i32) -> (i32, i32, i32, i32) {
    %c0_i32 = arith.constant 0 : i32
    %c0_i32_0 = arith.constant 0 : i32
    %c0_i32_1 = arith.constant 0 : i32
    %c0_i32_2 = arith.constant 0 : i32
    return %arg0, %c0_i32, %c0_i32_0, %c0_i32_1 : i32, i32, i32, i32
  }
  func.func @transform_4(%arg0: i32) -> (i32, i32, i32, i32) {
    %c0_i32 = arith.constant 0 : i32
    %c0_i32_0 = arith.constant 0 : i32
    %c0_i32_1 = arith.constant 0 : i32
    %c0_i32_2 = arith.constant 0 : i32
    %c0_i32_3 = arith.constant 0 : i32
    return %c0_i32, %c0_i32_0, %c0_i32_1, %c0_i32_2 : i32, i32, i32, i32
  }
  func.func @transform_5(%arg0: i32) -> (i32, i32) {
    %c0_i32 = arith.constant 0 : i32
    %c0_i32_0 = arith.constant 0 : i32
    %c0_i32_1 = arith.constant 0 : i32
    return %c0_i32, %c0_i32_0 : i32, i32
  }
  func.func @transform_6(%arg0: i32) -> (i32, i32, i32) {
    %c0_i32 = arith.constant 0 : i32
    %c0_i32_0 = arith.constant 0 : i32
    %c0_i32_1 = arith.constant 0 : i32
    return %arg0, %c0_i32, %c0_i32_0 : i32, i32, i32
  }
  func.func @transform_7(%arg0: i32) -> (i32, i32, i32) {
    %c0_i32 = arith.constant 0 : i32
    %c0_i32_0 = arith.constant 0 : i32
    %c0_i32_1 = arith.constant 0 : i32
    return %arg0, %c0_i32, %c0_i32_0 : i32, i32, i32
  }
  func.func @transform_8(%arg0: i32) -> (i32, i32, i32) {
    %c0_i32 = arith.constant 0 : i32
    %c0_i32_0 = arith.constant 0 : i32
    %c0_i32_1 = arith.constant 0 : i32
    return %arg0, %c0_i32, %c0_i32_0 : i32, i32, i32
  }
}

</mosaic_0001>

<bundles_post_ra>
// kernel: tpu_custom_call.1
= control target key start
LH: loop header
LB: loop body
LE: loop exit
PB: predicated region body
PF: predicated region fallthrough
CT: control target
= control target key end

     0   :  { %s3031_s0 = inlined_call_operand.vmem [shape: bf16[2,9,9,4], index: 0, kind: input, shape index: {}]   ;;  %s3032_s1 = inlined_call_operand.vmem [shape: bf16[2,9,9,4], index: 1, kind: input, shape index: {}]   ;;  %s3033_s2 = inlined_call_operand.vmem [shape: bf16[2,9,9,4], index: 2, kind: input, shape index: {}]   ;;  %s3034_s3 = inlined_call_operand.vmem [shape: bf16[2,9,9,4], index: 3, kind: input, shape index: {}]   ;;  %s3035_s4 = inlined_call_operand.vmem [shape: bf16[3,3,4,128], index: 4, kind: input, shape index: {}]   ;;  %s3036_s5 = inlined_call_operand.vmem [shape: f32[1,128], index: 5, kind: input, shape index: {}]   ;;  %s3037_s6 = inlined_call_operand.hbm [shape: f32[2,64,128], index: 6, kind: output, shape index: {0}]   ;;  %s3038_s7 = inlined_call_operand.hbm [shape: f32[2,1,128], index: 7, kind: output, shape index: {1}]   ;;  %s3039_s8 = inlined_call_operand.hbm [shape: f32[2,1,128], index: 8, kind: output, shape index: {2}]  }
   0x1   :  { %3042 = sst [smem:[#allocation9_spill]] %s3031_s0 }
   0x2   :  { %14 = vsyncpa [#allocation3], 0 }
   0x3   :  { %16 = vsyncpa [#allocation3 + $0x1], 0 }
   0x4   :  { %17 = vsyncpa [#allocation5], 0 }
   0x5   :  { %19 = vsyncpa [#allocation5 + $0x1], 0  ;;  %s2572_s27 = smov 0   ;;  %s2574_s28 = smov 0  }
   0x6   :  { %s2576_s29 = smov 0   ;;  %s2578_s30 = smov 0  }
   0x7 LB: > { %s2593_s9 = sadd.s32 4294967295, %s2520_s30   ;;  %s3040_s10 = sadd.s32 4294967294, %s2520_s30   ;;  %s2520_s30 = sphi %s2578_s30, %s3053_s30   ;;  %s2516_s29 = sphi %s2576_s29, %s3052_s29   ;;  %s2512_s28 = sphi %s2574_s28, %s3051_s28   ;;  %s2508_s27 = sphi %s2572_s27, %s3050_s27  }
   0x8   : > { %s2597_s11 = sadd.s32 1, %s2520_s30   ;;  %s178_s12 = sadd.s32 1, %s2516_s29 }
   0x9   : > { %s175_s13 = ssub.s32 %s2520_s30, %s2597_s11  ;;  %p188_p0 = scmp.ne.s32.totalorder %s2516_s29, %s2512_s28 }
   0xa   : > { %p176_p1 = scmp.eq.s32.totalorder %s175_s13, 0  ;;  %p189_p2 = scmp.eq.s32.totalorder %s2593_s9, 1 }
   0xb   : > { %p194_p3 = scmp.ne.s32.totalorder %s2512_s28, %s2508_s27  ;;  %p195_p4 = scmp.eq.s32.totalorder %s3040_s10, 1 }
   0xc   : > { %s2610_s14 = scalar_select %p176_p1, %s2516_s29, %s178_s12  }
   0xd   : > { %p2612_p5 = por %p189_p2, %p188_p0  ;;  %p2616_p6 = por %p195_p4, %p194_p3 }
   0xe   : > { %p2054_p7 = scmp.ge.s32.totalorder %s2520_s30, 1  ;;  %p303_p8 = scmp.lt.s32.totalorder %s2520_s30, 3 }
  0x10   : > { %p304_p9 = pnand %p2054_p7, %p303_p8 }
  0x11   : > { %p360_p10 = scmp.lt.s32.totalorder (!%p304_p9), %s2593_s9, 1  ;;  %s3045_s0 = sld [smem:[#allocation9_spill]] (!%p304_p9) }
  0x12   : > { %307 = sbr.rel (%p304_p9) target bundleno = 375 (0x177), region = 44  ;;  %s2180_s21 = sshll.u32 (!%p304_p9), %s2593_s9, 10 }
  0x13   : > { %s2920_s26 = scalar_lea.hbm (!%p304_p9), %s3037_s6, %s2180_s21 }
  0x17   : > { %v2060_v0 = vld [vmem:[%s3035_s4 + $0x2] sm:$0x3]  ;;  %vm433_vm0 = vcmask 1041408   ;;  %v389_v2 = vld [vmem:[%s3035_s4] sm:$0x3]  ;;  %s361_s23 = scalar_select %p360_p10, %s2593_s9, 1 }
  0x18   : > { %2319 = vmatprep.subr.msk.bf16.mxu1 %vm433_vm0, %v2060_v0  ;;  %2318 = vmatprep.subr.msk.bf16.mxu0 %vm433_vm0, %v2060_v0  ;;  %v435_v1 = vsel %vm433_vm0, %v2060_v0, 0  ;;  %v2077_v3 = vld [vmem:[%s3035_s4 + $0x4] sm:$0x3]  ;;  %vm420_vm1 = vcmask 31744   ;;  %v535_v4 = vsel %vm433_vm0, %v389_v2, 0 }
  0x19   : > { %2317 = vmatpush3.bf16.msra.mxu1 %v435_v1  ;;  %2227 = vmatpush3.bf16.msra.mxu0 %v435_v1  ;;  %s2638_s24 = smul.u32 72, %s361_s23  ;;  %v760_v5 = vsel %vm433_vm0, %v2077_v3, 0  ;;  %v2086_v7 = vld [vmem:[%s3035_s4 + $0x6] sm:$0x3]  ;;  %v2095_v8 = vld [vmem:[%s3035_s4 + $0x8] sm:$0x3] }
  0x1a   : > { %2320 = vmatprep.subr.msk.bf16.mxu1 %vm433_vm0, %v389_v2  ;;  %2321 = vmatprep.subr.msk.bf16.mxu0 %vm433_vm0, %v2077_v3  ;;  %vm618_vm2 = vsmask.f32 3328  ;;  %vm619_vm3 = vsmask.f32 7440  ;;  %v878_v13 = vsel %vm433_vm0, %v2086_v7, 0  ;;  %v2671_v14 = vsel %vm433_vm0, %v2095_v8, 0 }
  0x1b   : > { %s2644_s12 = scalar_lea.vmem %s3032_s1, %s2638_s24  ;;  %s2662_s22 = scalar_lea.vmem %s3045_s0, %s2638_s24  ;;  %v2688_v38 = vld [vmem:[%s3035_s4 + $0xa] sm:$0x3]  ;;  %vm2692_vm4 = vmor %vm618_vm2, %vm619_vm3 }
  0x1c   : > { %v2380_v6 = vld [vmem:[%s2644_s12] ss:$8 sps:$4 sm:$0xff]   ;;  %v2382_v10 = vld [vmem:[%s2644_s12 + $0x10] ss:$8 sps:$4 sm:$0xff]   ;;  %v603_v16 = vld [vmem:[%s2662_s22 + $0x4] sm:$0x1]  ;;  %s2725_s19 = scalar_lea.vmem %s3033_s2, %s2638_s24  ;;  %s2741_s23 = scalar_lea.vmem %s3034_s3, %s2638_s24 }
  0x1d   : > { %v2381_v9 = vld [vmem:[%s2644_s12 + $0x20] ss:$8 sps:$4 sm:$0xff]   ;;  %2228 = vmatprep.mubr.msk.bf16.mxu0 %vm420_vm1, %v2380_v6  ;;  %v2383_v11 = vld [vmem:[%s2644_s12 + $0x30] ss:$8 sps:$4 sm:$0xff]   ;;  %v605_v19 = vld [vmem:[%s2662_s22 + $0xc] sm:$0x1] }
  0x1e   : > { %2232 = vmatprep.mubr.msk.bf16.mxu1 %vm420_vm1, %v2381_v9  ;;  %2229 = vmatmul.mubr.msk.bf16.vlgmr.msra.gmra.mxu0 %vm420_vm1, %v2382_v10  ;;  %v2384_v12 = vld [vmem:[%s2662_s22] ss:$8 sps:$4 sm:$0xff]   ;;  %v2385_v18 = vld [vmem:[%s2662_s22 + $0x10] ss:$8 sps:$4 sm:$0xff]   ;;  %v631_v22 = vshll.u32 %v603_v16, 16  ;;  %v645_v25 = vshll.u32 %v605_v19, 16 }
  0x1f   : > { %2233 = vmatmul.mubr.msk.bf16.vlgmr.msra.gmra.mxu1 %vm420_vm1, %v2383_v11  ;;  %2247 = vmatpush3.bf16.msra.mxu0 %v760_v5  ;;  %v602_v15 = vld [vmem:[%s2662_s22] sm:$0xf]  ;;  %v604_v17 = vld [vmem:[%s2662_s22 + $0x8] sm:$0xf]  ;;  %v606_v26 = vld [vmem:[%s2662_s22 + $0x10] sm:$0xf] }
  0x20   : > { %2237 = vmatpush3.bf16.msra.mxu1 %v535_v4  ;;  %2238 = vmatprep.mubr.msk.bf16.mxu1 %vm420_vm1, %v2384_v12  ;;  %v622_v20 = vshrl.u32 %v602_v15, 16  ;;  %v625_v21 = vshll.u32 %v602_v15, 16  ;;  %v636_v23 = vshrl.u32 %v604_v17, 16  ;;  %v639_v24 = vshll.u32 %v604_v17, 16  ;;  %v607_v27 = vld [vmem:[%s2662_s22 + $0x14] sm:$0x1] }
  0x21   : > { %2322 = vmatprep.subr.msk.bf16.mxu1 %vm433_vm0, %v2086_v7  ;;  %2323 = vmatprep.subr.msk.bf16.mxu0 %vm433_vm0, %v2095_v8  ;;  %v633_v30 = vrot.slane %v631_v22, 5  ;;  %v608_v32 = vld [vmem:[%s2662_s22 + $0x18] sm:$0xf]  ;;  %v647_v34 = vrot.slane %v645_v25, 5  ;;  %v609_v35 = vld [vmem:[%s2662_s22 + $0x1c] sm:$0x1] }
  0x22   : > { %v624_v28 = vrot.slane %v622_v20, 4  ;;  %v627_v29 = vrot.slane %v625_v21, 5  ;;  %v638_v31 = vrot.slane %v636_v23, 4  ;;  %v641_v33 = vrot.slane %v639_v24, 5  ;;  %v2386_v52 = vld [vmem:[%s2662_s22 + $0x20] ss:$8 sps:$4 sm:$0xff]  }
  0x23   : > { %v650_v36 = vshrl.u32 %v606_v26, 16  ;;  %v653_v37 = vshll.u32 %v606_v26, 16  ;;  %v659_v40 = vshll.u32 %v607_v27, 16  ;;  %v664_v41 = vshrl.u32 %v608_v32, 16  ;;  %v2387_v58 = vld [vmem:[%s2662_s22 + $0x30] ss:$8 sps:$4 sm:$0xff]  }
  0x24   : > { %v628_v39 = vor.u32 %v627_v29, %v624_v28  ;;  %v667_v42 = vshll.u32 %v608_v32, 16  ;;  %v642_v44 = vor.u32 %v641_v33, %v638_v31  ;;  %v673_v47 = vshll.u32 %v609_v35, 16  ;;  %v610_v59 = vld [vmem:[%s2662_s22 + $0x20] sm:$0xf]  ;;  %v611_v60 = vld [vmem:[%s2662_s22 + $0x24] sm:$0x1] }
  0x25   : > { %v652_v45 = vrot.slane %v650_v36, 4  ;;  %v655_v46 = vrot.slane %v653_v37, 5  ;;  %v661_v49 = vrot.slane %v659_v40, 5  ;;  %v666_v50 = vrot.slane %v664_v41, 4  ;;  %v612_v63 = vld [vmem:[%s2662_s22 + $0x28] sm:$0xf] }
  0x26   : > { %v629_v48 = vrot.slane %v628_v39, 4  ;;  %v669_v51 = vrot.slane %v667_v42, 5  ;;  %v643_v53 = vrot.slane %v642_v44, 4  ;;  %v675_v55 = vrot.slane %v673_v47, 5  ;;  %v613_v0 = vld [vmem:[%s2662_s22 + $0x2c] sm:$0x1] }
  0x27   : > { %2239 = vmatmul.mubr.msk.bf16.vlgmr.msra.gmra.mxu1 %vm420_vm1, %v2385_v18  ;;  %v656_v54 = vor.u32 %v655_v46, %v652_v45  ;;  %v678_v1 = vshrl.u32 %v610_v59, 16  ;;  %v681_v4 = vshll.u32 %v610_v59, 16  ;;  %v687_v5 = vshll.u32 %v611_v60, 16  ;;  %v614_v6 = vld [vmem:[%s2662_s22 + $0x30] sm:$0xf] }
  0x28   : > { %2257 = vmatpush3.bf16.msra.mxu1 %v878_v13  ;;  %v634_v56 = vsel %vm2692_vm4, %v629_v48, %v633_v30  ;;  %v670_v57 = vor.u32 %v669_v51, %v666_v50  ;;  %2242 = vmatprep.mubr.msk.bf16.mxu1 %vm420_vm1, %v2386_v52  ;;  %v648_v61 = vsel %vm2692_vm4, %v643_v53, %v647_v34  ;;  %v692_v9 = vshrl.u32 %v612_v63, 16  ;;  %v615_v11 = vld [vmem:[%s2662_s22 + $0x34] sm:$0x1]  ;;  %v616_v17 = vld [vmem:[%s2662_s22 + $0x38] sm:$0xf] }
  0x29   : > { %2324 = vmatprep.subr.msk.bf16.mxu1 %vm433_vm0, %v2688_v38  ;;  %v657_v62 = vrot.slane %v656_v54, 4  ;;  %v2078_v2 = vcombine.low %v634_v56, %v648_v61  ;;  %v680_v8 = vrot.slane %v678_v1, 4  ;;  %v695_v10 = vshll.u32 %v612_v63, 16  ;;  %v2121_v18 = vld [vmem:[%s3035_s4 + $0xc] sm:$0x3] }
  0x2a   : > { %v671_v3 = vrot.slane %v670_v57, 4  ;;  %v683_v13 = vrot.slane %v681_v4, 5  ;;  %v689_v15 = vrot.slane %v687_v5, 5  ;;  %v701_v16 = vshll.u32 %v613_v0, 16  ;;  %v617_v22 = vld [vmem:[%s2662_s22 + $0x3c] sm:$0x1] }
  0x2b   : > { %v662_v7 = vsel %vm2692_vm4, %v657_v62, %v661_v49  ;;  %2248 = vmatprep.mubr.msk.bf16.mxu0 %vm420_vm1, %v2078_v2  ;;  %v694_v20 = vrot.slane %v692_v9, 4  ;;  %v697_v21 = vrot.slane %v695_v10, 5  ;;  %v706_v23 = vshrl.u32 %v614_v6, 16  ;;  %v2388_v35 = vld [vmem:[%s2725_s19] ss:$8 sps:$4 sm:$0xff]  }
  0x2c   : > { %v676_v12 = vsel %vm2692_vm4, %v671_v3, %v675_v55  ;;  %v684_v24 = vor.u32 %v683_v13, %v680_v8  ;;  %v703_v25 = vrot.slane %v701_v16, 5  ;;  %v709_v26 = vshll.u32 %v614_v6, 16  ;;  %v2389_v44 = vld [vmem:[%s2725_s19 + $0x10] ss:$8 sps:$4 sm:$0xff]   ;;  %v2138_v51 = vld [vmem:[%s3035_s4 + $0xe] sm:$0x3] }
  0x2d   : > { %v2079_v19 = vcombine.low %v662_v7, %v676_v12  ;;  %v715_v27 = vshll.u32 %v615_v11, 16  ;;  %v698_v28 = vor.u32 %v697_v21, %v694_v20  ;;  %v708_v29 = vrot.slane %v706_v23, 4  ;;  %v2392_v53 = vld [vmem:[%s2725_s19 + $0x20] ss:$8 sps:$4 sm:$0xff]   ;;  %v2393_v57 = vld [vmem:[%s2725_s19 + $0x30] ss:$8 sps:$4 sm:$0xff]  }
  0x2e   : > { %v720_v30 = vshrl.u32 %v616_v17, 16  ;;  %v723_v31 = vshll.u32 %v616_v17, 16  ;;  %v685_v32 = vrot.slane %v684_v24, 4  ;;  %v711_v33 = vrot.slane %v709_v26, 5  ;;  %v1072_v59 = vld [vmem:[%s2725_s19 + $0x4] sm:$0x1] }
  0x2f   : > { %2243 = vmatmul.mubr.msk.bf16.gmra.mxu1 %vm420_vm1, %v2387_v58  ;;  %2249 = vmatmul.mubr.msk.bf16.vlgmr.msra.gmra.mxu0 %vm420_vm1, %v2079_v19  ;;  %v729_v34 = vshll.u32 %v617_v22, 16  ;;  %v699_v36 = vrot.slane %v698_v28, 4  ;;  %v717_v42 = vrot.slane %v715_v27, 5  ;;  %v1226_v49 = vsel %vm433_vm0, %v2688_v38, 0  ;;  %v2390_v38 = vld [vmem:[%s2741_s23] ss:$8 sps:$4 sm:$0xff]  }
  0x30   : > { %2267 = vmatpush3.bf16.msra.mxu0 %v2671_v14  ;;  %v722_v37 = vrot.slane %v720_v30, 4  ;;  %v725_v39 = vrot.slane %v723_v31, 5  ;;  %v690_v40 = vsel %vm2692_vm4, %v685_v32, %v689_v15  ;;  %v712_v41 = vor.u32 %v711_v33, %v708_v29  ;;  %2258 = vmatprep.mubr.msk.bf16.mxu1 %vm420_vm1, %v2388_v35  ;;  %v1071_v58 = vld [vmem:[%s2725_s19] sm:$0xf]  ;;  %v1073_v60 = vld [vmem:[%s2725_s19 + $0x8] sm:$0xf] }
  0x31   : > { %2325 = vmatprep.subr.msk.bf16.mxu0 %vm433_vm0, %v2121_v18  ;;  %v704_v14 = vsel %vm2692_vm4, %v699_v36, %v703_v25  ;;  %v731_v46 = vrot.slane %v729_v34, 5  ;;  %v1345_v56 = vsel %vm433_vm0, %v2121_v18, 0  ;;  %v1074_v61 = vld [vmem:[%s2725_s19 + $0xc] sm:$0x1]  ;;  %v1088_v62 = vshrl.u32 %v1071_v58, 16 }
  0x32   : > { %v726_v45 = vor.u32 %v725_v39, %v722_v37  ;;  %v2080_v47 = vcombine.low %v690_v40, %v704_v14  ;;  %v713_v48 = vrot.slane %v712_v41, 4  ;;  %v1091_v63 = vshll.u32 %v1071_v58, 16  ;;  %v1075_v2 = vld [vmem:[%s2725_s19 + $0x10] sm:$0xf]  ;;  %v1076_v6 = vld [vmem:[%s2725_s19 + $0x14] sm:$0x1] }
  0x33   : > { %v1097_v0 = vshll.u32 %v1072_v59, 16  ;;  %v1102_v1 = vshrl.u32 %v1073_v60, 16  ;;  %v2391_v3 = vld [vmem:[%s2741_s23 + $0x10] ss:$8 sps:$4 sm:$0xff]   ;;  %v1105_v4 = vshll.u32 %v1073_v60, 16  ;;  %v1111_v5 = vshll.u32 %v1074_v61, 16 }
  0x34   : > { %v727_v50 = vrot.slane %v726_v45, 4  ;;  %2252 = vmatprep.mubr.msk.bf16.mxu0 %vm420_vm1, %v2080_v47  ;;  %v718_v52 = vsel %vm2692_vm4, %v713_v48, %v717_v42  ;;  %v1077_v7 = vld [vmem:[%s2725_s19 + $0x18] sm:$0xf]  ;;  %v2394_v8 = vld [vmem:[%s2741_s23 + $0x20] ss:$8 sps:$4 sm:$0xff]   ;;  %v1090_v9 = vrot.slane %v1088_v62, 4 }
  0x35   : > { %v1093_v10 = vrot.slane %v1091_v63, 5  ;;  %v1099_v11 = vrot.slane %v1097_v0, 5  ;;  %v1104_v12 = vrot.slane %v1102_v1, 4  ;;  %v1078_v13 = vld [vmem:[%s2725_s19 + $0x1c] sm:$0x1]  ;;  %v1107_v15 = vrot.slane %v1105_v4, 5 }
  0x36   : > { %v732_v54 = vsel %vm2692_vm4, %v727_v50, %v731_v46  ;;  %v1113_v16 = vrot.slane %v1111_v5, 5  ;;  %v1116_v17 = vshrl.u32 %v1075_v2, 16  ;;  %v1119_v18 = vshll.u32 %v1075_v2, 16  ;;  %v2778_v27 = vld [vmem:[%s3035_s4 + $0x10] sm:$0x3] }
  0x37   : > { %2259 = vmatmul.mubr.msk.bf16.vlgmr.msra.gmra.mxu1 %vm420_vm1, %v2389_v44  ;;  %v2081_v55 = vcombine.low %v718_v52, %v732_v54  ;;  %v1094_v19 = vor.u32 %v1093_v10, %v1090_v9  ;;  %v1125_v20 = vshll.u32 %v1076_v6, 16  ;;  %v1130_v21 = vshrl.u32 %v1077_v7, 16  ;;  %v1079_v39 = vld [vmem:[%s2725_s19 + $0x20] sm:$0xf]  ;;  %v1080_v40 = vld [vmem:[%s2725_s19 + $0x24] sm:$0x1] }
  0x38   : > { %2277 = vmatpush3.bf16.msra.mxu1 %v1226_v49  ;;  %2262 = vmatprep.mubr.msk.bf16.mxu1 %vm420_vm1, %v2392_v53  ;;  %v1133_v22 = vshll.u32 %v1077_v7, 16  ;;  %v1108_v23 = vor.u32 %v1107_v15, %v1104_v12  ;;  %v1118_v24 = vrot.slane %v1116_v17, 4  ;;  %v1121_v25 = vrot.slane %v1119_v18, 5  ;;  %v1081_v41 = vld [vmem:[%s2725_s19 + $0x28] sm:$0xf] }
  0x39   : > { %2326 = vmatprep.subr.msk.bf16.mxu1 %vm433_vm0, %v2138_v51  ;;  %2253 = vmatmul.mubr.msk.bf16.gmra.mxu0 %vm420_vm1, %v2081_v55  ;;  %v1139_v26 = vshll.u32 %v1078_v13, 16  ;;  %v1095_v28 = vrot.slane %v1094_v19, 4  ;;  %v1132_v29 = vrot.slane %v1130_v21, 4  ;;  %v1464_v31 = vsel %vm433_vm0, %v2138_v51, 0  ;;  %v2395_v42 = vld [vmem:[%s2741_s23 + $0x30] ss:$8 sps:$4 sm:$0xff]  }
  0x3a   : > { %2268 = vmatprep.mubr.msk.bf16.mxu0 %vm420_vm1, %v2390_v38  ;;  %v1135_v30 = vrot.slane %v1133_v22, 5  ;;  %v1109_v32 = vrot.slane %v1108_v23, 4  ;;  %v1122_v33 = vor.u32 %v1121_v25, %v1118_v24  ;;  %v1127_v34 = vrot.slane %v1125_v20, 5  ;;  %v1082_v45 = vld [vmem:[%s2725_s19 + $0x2c] sm:$0x1] }
  0x3b   : > { %v1141_v35 = vrot.slane %v1139_v26, 5  ;;  %v1100_v36 = vsel %vm2692_vm4, %v1095_v28, %v1099_v11  ;;  %v1144_v46 = vshrl.u32 %v1079_v39, 16  ;;  %v1147_v47 = vshll.u32 %v1079_v39, 16  ;;  %v2396_v50 = vld [vmem:[%s2662_s22 + $0x8] ss:$8 sps:$4 sm:$0xff]  }
  0x3c   : > { %v1136_v37 = vor.u32 %v1135_v30, %v1132_v29  ;;  %v1114_v44 = vsel %vm2692_vm4, %v1109_v32, %v1113_v16  ;;  %v1123_v14 = vrot.slane %v1122_v33, 4  ;;  %v1153_v51 = vshll.u32 %v1080_v40, 16  ;;  %v1083_v53 = vld [vmem:[%s2725_s19 + $0x30] sm:$0xf]  ;;  %v1085_v62 = vld [vmem:[%s2725_s19 + $0x38] sm:$0xf] }
  0x3d   : > { %v2105_v48 = vcombine.low %v1100_v36, %v1114_v44  ;;  %v1158_v52 = vshrl.u32 %v1081_v41, 16  ;;  %v1146_v38 = vrot.slane %v1144_v46, 4  ;;  %v1149_v55 = vrot.slane %v1147_v47, 5  ;;  %v1086_v2 = vld [vmem:[%s2725_s19 + $0x3c] sm:$0x1] }
  0x3e   : > { %v1137_v49 = vrot.slane %v1136_v37, 4  ;;  %v1128_v54 = vsel %vm2692_vm4, %v1123_v14, %v1127_v34  ;;  %v1155_v59 = vrot.slane %v1153_v51, 5  ;;  %v1167_v61 = vshll.u32 %v1082_v45, 16  ;;  %v2397_v16 = vld [vmem:[%s2662_s22 + $0x18] ss:$8 sps:$4 sm:$0xff]  }
  0x3f   : > { %2263 = vmatmul.mubr.msk.bf16.gmra.mxu1 %vm420_vm1, %v2393_v57  ;;  %v1084_v57 = vld [vmem:[%s2725_s19 + $0x34] sm:$0x1]  ;;  %v1160_v60 = vrot.slane %v1158_v52, 4  ;;  %v1150_v0 = vor.u32 %v1149_v55, %v1146_v38  ;;  %v1175_v5 = vshll.u32 %v1083_v53, 16  ;;  %v1186_v7 = vshrl.u32 %v1085_v62, 16 }
  0x40   : > { %2278 = vmatprep.mubr.msk.bf16.mxu1 %vm420_vm1, %v2105_v48  ;;  %v1142_v58 = vsel %vm2692_vm4, %v1137_v49, %v1141_v35  ;;  %v1169_v4 = vrot.slane %v1167_v61, 5  ;;  %v1181_v6 = vshll.u32 %v1084_v57, 16  ;;  %v1189_v11 = vshll.u32 %v1085_v62, 16  ;;  %v2398_v29 = vld [vmem:[%s2662_s22 + $0x28] ss:$8 sps:$4 sm:$0xff]  }
  0x41   : > { %2269 = vmatmul.mubr.msk.bf16.vlgmr.msra.gmra.mxu0 %vm420_vm1, %v2391_v3  ;;  %v2106_v63 = vcombine.low %v1128_v54, %v1142_v58  ;;  %v1172_v3 = vshrl.u32 %v1083_v53, 16  ;;  %v1177_v12 = vrot.slane %v1175_v5, 5  ;;  %v1188_v13 = vrot.slane %v1186_v7, 4  ;;  %v2147_v30 = vld [vmem:[%s2662_s22 + $0x8] sm:$0xf] }
  0x42   : > { %2287 = vmatpush3.bf16.msra.mxu0 %v1345_v56  ;;  %2272 = vmatprep.mubr.msk.bf16.mxu0 %vm420_vm1, %v2394_v8  ;;  %v1161_v56 = vshll.u32 %v1081_v41, 16  ;;  %v1151_v8 = vrot.slane %v1150_v0, 4  ;;  %v1195_v15 = vshll.u32 %v1086_v2, 16  ;;  %v1191_v19 = vrot.slane %v1189_v11, 5  ;;  %v2400_v32 = vld [vmem:[%s2644_s12 + $0x8] ss:$8 sps:$4 sm:$0xff]  }
  0x43   : > { %2327 = vmatprep.subr.msk.bf16.mxu0 %vm433_vm0, %v2778_v27  ;;  %v1174_v10 = vrot.slane %v1172_v3, 4  ;;  %v1183_v21 = vrot.slane %v1181_v6, 5  ;;  %v1694_v25 = vsel %vm433_vm0, %v2778_v27, 0  ;;  %v2148_v33 = vld [vmem:[%s2662_s22 + $0xc] sm:$0x1]  ;;  %v1556_v35 = vshrl.u32 %v2147_v30, 16 }
  0x44   : > { %v1163_v1 = vrot.slane %v1161_v56, 5  ;;  %v1156_v17 = vsel %vm2692_vm4, %v1151_v8, %v1155_v59  ;;  %v1192_v23 = vor.u32 %v1191_v19, %v1188_v13  ;;  %v1197_v24 = vrot.slane %v1195_v15, 5  ;;  %v2149_v34 = vld [vmem:[%s2662_s22 + $0x10] sm:$0xf]  ;;  %v2150_v37 = vld [vmem:[%s2662_s22 + $0x14] sm:$0x1] }
  0x45   : > { %v1178_v20 = vor.u32 %v1177_v12, %v1174_v10  ;;  %v1559_v39 = vshll.u32 %v2147_v30, 16  ;;  %v1565_v27 = vshll.u32 %v2148_v33, 16  ;;  %v1570_v40 = vshrl.u32 %v2149_v34, 16  ;;  %v2151_v45 = vld [vmem:[%s2662_s22 + $0x18] sm:$0xf] }
  0x46   : > { %v1164_v9 = vor.u32 %v1163_v1, %v1160_v60  ;;  %v1573_v44 = vshll.u32 %v2149_v34, 16  ;;  %v1579_v14 = vshll.u32 %v2150_v37, 16  ;;  %v2399_v51 = vld [vmem:[%s2662_s22 + $0x38] ss:$8 sps:$4 sm:$0xff]   ;;  %v2154_v38 = vld [vmem:[%s2662_s22 + $0x24] sm:$0x1] }
  0x47   : > { %2279 = vmatmul.mubr.msk.bf16.vlgmr.msra.gmra.mxu1 %vm420_vm1, %v2106_v63  ;;  %v1179_v28 = vrot.slane %v1178_v20, 4  ;;  %v1561_v47 = vrot.slane %v1559_v39, 5  ;;  %v1567_v48 = vrot.slane %v1565_v27, 5  ;;  %v1572_v49 = vrot.slane %v1570_v40, 4  ;;  %v2153_v54 = vld [vmem:[%s2662_s22 + $0x20] sm:$0xf] }
  0x48   : > { %2297 = vmatpush3.bf16.msra.mxu1 %v1464_v31  ;;  %v1165_v18 = vrot.slane %v1164_v9, 4  ;;  %v1193_v31 = vrot.slane %v1192_v23, 4  ;;  %v1575_v52 = vrot.slane %v1573_v44, 5  ;;  %v1581_v53 = vrot.slane %v1579_v14, 5  ;;  %v2401_v63 = vld [vmem:[%s2644_s12 + $0x18] ss:$8 sps:$4 sm:$0xff]  }
  0x49   : > { %2273 = vmatmul.mubr.msk.bf16.gmra.mxu0 %vm420_vm1, %v2395_v42  ;;  %v1184_v36 = vsel %vm2692_vm4, %v1179_v28, %v1183_v21  ;;  %v1558_v42 = vrot.slane %v1556_v35, 4  ;;  %v1584_v56 = vshrl.u32 %v2151_v45, 16  ;;  %v1587_v57 = vshll.u32 %v2151_v45, 16  ;;  %v2402_v6 = vld [vmem:[%s2644_s12 + $0x28] ss:$8 sps:$4 sm:$0xff]  }
  0x4a   : > { %2288 = vmatprep.mubr.msk.bf16.mxu0 %vm420_vm1, %v2396_v50  ;;  %v1170_v22 = vsel %vm2692_vm4, %v1165_v18, %v1169_v4  ;;  %v1198_v41 = vsel %vm2692_vm4, %v1193_v31, %v1197_v24  ;;  %v2152_v50 = vld [vmem:[%s2662_s22 + $0x1c] sm:$0x1]  ;;  %v1576_v59 = vor.u32 %v1575_v52, %v1572_v49  ;;  %v1598_v60 = vshrl.u32 %v2153_v54, 16  ;;  %v2155_v11 = vld [vmem:[%s2662_s22 + $0x28] sm:$0xf] }
  0x4b   : > { %v2107_v26 = vcombine.low %v1156_v17, %v1170_v22  ;;  %v2108_v46 = vcombine.low %v1184_v36, %v1198_v41  ;;  %v1562_v55 = vor.u32 %v1561_v47, %v1558_v42  ;;  %v1593_v58 = vshll.u32 %v2152_v50, 16  ;;  %v2156_v15 = vld [vmem:[%s2662_s22 + $0x2c] sm:$0x1]  ;;  %v2158_v17 = vld [vmem:[%s2662_s22 + $0x34] sm:$0x1] }
  0x4c   : > { %v1601_v61 = vshll.u32 %v2153_v54, 16  ;;  %v1607_v62 = vshll.u32 %v2154_v38, 16  ;;  %v1586_v1 = vrot.slane %v1584_v56, 4  ;;  %v1589_v2 = vrot.slane %v1587_v57, 5  ;;  %v2159_v22 = vld [vmem:[%s2662_s22 + $0x38] sm:$0xf] }
  0x4d   : > { %2282 = vmatprep.mubr.msk.bf16.mxu1 %vm420_vm1, %v2107_v26  ;;  %v1563_v0 = vrot.slane %v1562_v55, 4  ;;  %v1577_v3 = vrot.slane %v1576_v59, 4  ;;  %v1600_v4 = vrot.slane %v1598_v60, 4  ;;  %v1595_v9 = vrot.slane %v1593_v58, 5  ;;  %v2160_v28 = vld [vmem:[%s2662_s22 + $0x3c] sm:$0x1] }
  0x4e   : > { %v1603_v5 = vrot.slane %v1601_v61, 5  ;;  %v1590_v8 = vor.u32 %v1589_v2, %v1586_v1  ;;  %v1609_v10 = vrot.slane %v1607_v62, 5  ;;  %v1612_v20 = vshrl.u32 %v2155_v11, 16  ;;  %v2161_v33 = vld [vmem:[%s2662_s22 + $0x40] sm:$0xf] }
  0x4f   : > { %2283 = vmatmul.mubr.msk.bf16.gmra.mxu1 %vm420_vm1, %v2108_v46  ;;  %v1568_v7 = vsel %vm2692_vm4, %v1563_v0, %v1567_v48  ;;  %v1582_v12 = vsel %vm2692_vm4, %v1577_v3, %v1581_v53  ;;  %v1615_v21 = vshll.u32 %v2155_v11, 16  ;;  %v1621_v24 = vshll.u32 %v2156_v15, 16  ;;  %v2162_v39 = vld [vmem:[%s2662_s22 + $0x44] sm:$0x1]  ;;  %v2403_v47 = vld [vmem:[%s2644_s12 + $0x38] ss:$8 sps:$4 sm:$0xff]  }
  0x50   : > { %2298 = vmatprep.mubr.msk.bf16.mxu1 %vm420_vm1, %v2400_v32  ;;  %v1604_v13 = vor.u32 %v1603_v5, %v1600_v4  ;;  %v2164_v18 = vcombine.low %v1568_v7, %v1582_v12  ;;  %v1591_v19 = vrot.slane %v1590_v8, 4  ;;  %v1614_v30 = vrot.slane %v1612_v20, 4  ;;  %s2884_s12 = sand.u32 1, %s2512_s28  }
  0x51   : > { %2289 = vmatmul.mubr.msk.bf16.vlgmr.msra.gmra.mxu0 %vm420_vm1, %v2397_v16  ;;  %v2157_v16 = vld [vmem:[%s2662_s22 + $0x30] sm:$0xf]  ;;  %v1617_v31 = vrot.slane %v1615_v21, 5  ;;  %v1635_v32 = vshll.u32 %v2158_v17, 16  ;;  %v1623_v35 = vrot.slane %v1621_v24, 5  ;;  %v1640_v42 = vshrl.u32 %v2159_v22, 16 }
  0x52   : > { %2307 = vmatpush3.bf16.msra.mxu0 %v1694_v25  ;;  %2292 = vmatprep.mubr.msk.bf16.mxu0 %vm420_vm1, %v2398_v29  ;;  %v1605_v23 = vrot.slane %v1604_v13, 4  ;;  %v1626_v25 = vshrl.u32 %v2157_v16, 16  ;;  %v1629_v26 = vshll.u32 %v2157_v16, 16  ;;  %v1596_v29 = vsel %vm2692_vm4, %v1591_v19, %v1595_v9  ;;  %s2055_s18 = sshll.u32 %s2884_s12, 6  ;;  %s1853_s24 = scalar_lea.sflag [#allocation3], %s2884_s12 }
  0x53   : > { %v1618_v40 = vor.u32 %v1617_v31, %v1614_v30  ;;  %v1637_v41 = vrot.slane %v1635_v32, 5  ;;  %v1643_v14 = vshll.u32 %v2159_v22, 16  ;;  %v1649_v45 = vshll.u32 %v2160_v28, 16  ;;  %s2899_s19 = scalar_lea.vmem [#allocation2], %s2055_s18  ;;  %s2522_s22 = smov [#allocation2]  }
  0x54   : > { %v1610_v34 = vsel %vm2692_vm4, %v1605_v23, %v1609_v10  ;;  %v1628_v36 = vrot.slane %v1626_v25, 4  ;;  %v1631_v37 = vrot.slane %v1629_v26, 5  ;;  %v1654_v46 = vshrl.u32 %v2161_v33, 16  ;;  %s1874_s20 = sshll.u32 %s2899_s19, 4  ;;  %s2408_s17 = sshll.u32 %s2522_s22, 4  ;;  %s2914_s20 = int_to_ptr.vmem [resolvable:$true] %s1874_s20  ;;  %s2409_s17 = int_to_ptr.vmem [resolvable:$false] %s2408_s17 }
  0x55   : > { %v2165_v27 = vcombine.low %v1596_v29, %v1610_v34  ;;  %v1619_v48 = vrot.slane %v1618_v40, 4  ;;  %v1642_v49 = vrot.slane %v1640_v42, 4  ;;  %v1657_v50 = vshll.u32 %v2161_v33, 16  ;;  %s2404_s13 = scalar_lea.vmem %s2914_s20, 1024  ;;  %s2410_s18 = scalar_lea.vmem %s2409_s17, 2048 }
  0x56   : > { %v1632_v44 = vor.u32 %v1631_v37, %v1628_v36  ;;  %v1645_v53 = vrot.slane %v1643_v14, 5  ;;  %v1656_v54 = vrot.slane %v1654_v46, 4  ;;  %v1651_v58 = vrot.slane %v1649_v45, 5  ;;  %p2405_p11 = scmp.ne.s32.totalorder %s2914_s20, %s2404_s13  ;;  %p2411_p0 = scmp.lt.s32.totalorder %s2914_s20, %s2409_s17 }
  0x57   : > { %2299 = vmatmul.mubr.msk.bf16.vlgmr.msra.gmra.mxu1 %vm420_vm1, %v2401_v63  ;;  %v1624_v38 = vsel %vm2692_vm4, %v1619_v48, %v1623_v35  ;;  %v1659_v55 = vrot.slane %v1657_v50, 5  ;;  %p2412_p1 = scmp.lt.s32.totalorder %s2410_s18, %s2404_s13 }
  0x58   : > { %2302 = vmatprep.mubr.msk.bf16.mxu1 %vm420_vm1, %v2402_v6  ;;  %v1633_v52 = vrot.slane %v1632_v44, 4  ;;  %v1646_v57 = vor.u32 %v1645_v53, %v1642_v49  ;;  %p2406_p12 = pnand %p2405_p11, %p2612_p5 }
  0x59   : > { %2293 = vmatmul.mubr.msk.bf16.gmra.mxu0 %vm420_vm1, %v2399_v51  ;;  %v1663_v51 = vshll.u32 %v2162_v39, 16  ;;  %v1660_v60 = vor.u32 %v1659_v55, %v1656_v54  ;;  %p2413_p2 = por %p2412_p1, %p2411_p0 }
  0x5a   : > { %2308 = vmatprep.mubr.msk.bf16.mxu0 %vm420_vm1, %v2164_v18  ;;  %v1638_v56 = vsel %vm2692_vm4, %v1633_v52, %v1637_v41  ;;  %v1647_v62 = vrot.slane %v1646_v57, 4  ;;  %p2407_p13 = pneg %p2406_p12 }
  0x5b   : > { %v2166_v59 = vcombine.low %v1624_v38, %v1638_v56  ;;  %v1665_v61 = vrot.slane %v1663_v51, 5  ;;  %v1661_v63 = vrot.slane %v1660_v60, 4 }
  0x5c   : > { %v1652_v0 = vsel %vm2692_vm4, %v1647_v62, %v1651_v58  ;;  %p2414_p3 = pnand %p2413_p2, %p2407_p13 }
  0x5d   : > { %v1666_v1 = vsel %vm2692_vm4, %v1661_v63, %v1665_v61 }
  0x5e   : > { %v2167_v2 = vcombine.low %v1652_v0, %v1666_v1 }
  0x5f   : > { %2303 = vmatmul.mubr.msk.bf16.gmra.mxu1 %vm420_vm1, %v2403_v47 }
  0x61   : > { %2309 = vmatmul.mubr.msk.bf16.vlgmr.msra.gmra.mxu0 %vm420_vm1, %v2165_v27 }
  0x62   : > { %2312 = vmatprep.mubr.msk.bf16.mxu0 %vm420_vm1, %v2166_v59 }
  0x69   : > { %2313 = vmatmul.mubr.msk.bf16.gmra.mxu0 %vm420_vm1, %v2167_v2 }
  0xde   : > { %v2230_v5 = vpop.f32.mrf.mxu0 }
  0xdf   : > { %v2234_v3 = vpop.f32.mrf.mxu1 }
  0xe0   : > { %v471_v8 = vpop.f32.mrf.mxu0 }
  0xe1   : > { %v487_v4 = vpop.f32.mrf.mxu1 }
  0xe2   : > { %v2231_v11 = vpop.f32.mrf.mxu0 }
  0xe3   : > { %v2869_v6 = vpop.f32.mrf.mxu1 }
  0xe4   : > { %v474_v15 = vpop.f32.mrf.mxu0 }
  0xe5   : > { %v2871_v7 = vpop.f32.mrf.mxu1 }
  0xe7   : > { %v2240_v9 = vpop.f32.mrf.mxu1 }
  0xe8   : > { %v580_v14 = vadd.f32 %v2240_v9, %v2230_v5 }
  0xe9   : > { %v571_v10 = vpop.f32.mrf.mxu1 }
  0xea   : > { %v572_v47 = vadd.f32 %v571_v10, %v471_v8 }
  0xeb   : > { %v2241_v12 = vpop.f32.mrf.mxu1 }
  0xec   : > { %v583_v50 = vadd.f32 %v2241_v12, %v2231_v11 }
  0xed   : > { %v574_v13 = vpop.f32.mrf.mxu1 }
  0xee   : > { %v575_v38 = vadd.f32 %v574_v13, %v474_v15 }
  0xef   : > { %v2244_v16 = vpop.f32.mrf.mxu1  ;;  %v2250_v43 = vpop.f32.mrf.mxu0 }
  0xf0   : > { %v829_v49 = vadd.f32 %v2250_v43, %v580_v14  ;;  %v596_v59 = vadd.f32 %v2244_v16, %v2234_v3 }
  0xf1   : > { %v587_v17 = vpop.f32.mrf.mxu1  ;;  %v796_v18 = vpop.f32.mrf.mxu0 }
  0xf2   : > { %v827_v53 = vadd.f32 %v796_v18, %v572_v47  ;;  %v588_v1 = vadd.f32 %v587_v17, %v487_v4 }
  0xf3   : > { %v2245_v19 = vpop.f32.mrf.mxu1  ;;  %v2251_v20 = vpop.f32.mrf.mxu0 }
  0xf4   : > { %v830_v56 = vadd.f32 %v2251_v20, %v583_v50  ;;  %v599_v20 = vadd.f32 %v2245_v19, %v2869_v6 }
  0xf5   : > { %v590_v21 = vpop.f32.mrf.mxu1  ;;  %v799_v22 = vpop.f32.mrf.mxu0 }
  0xf6   : > { %v828_v0 = vadd.f32 %v799_v22, %v575_v38  ;;  %v591_v3 = vadd.f32 %v590_v21, %v2871_v7 }
  0xf7   : > { %v2260_v23 = vpop.f32.mrf.mxu1 }
  0xf8   : > { %v947_v54 = vadd.f32 %v2260_v23, %v829_v49 }
  0xf9   : > { %v914_v24 = vpop.f32.mrf.mxu1  ;;  %v2254_v25 = vpop.f32.mrf.mxu0 }
  0xfa   : > { %v945_v57 = vadd.f32 %v914_v24, %v827_v53  ;;  %v833_v10 = vadd.f32 %v2254_v25, %v596_v59 }
  0xfb   : > { %v2261_v26 = vpop.f32.mrf.mxu1  ;;  %v812_v28 = vpop.f32.mrf.mxu0 }
  0xfc   : > { %v948_v62 = vadd.f32 %v2261_v26, %v830_v56  ;;  %v831_v18 = vadd.f32 %v812_v28, %v588_v1 }
  0xfd   : > { %v917_v29 = vpop.f32.mrf.mxu1  ;;  %v2255_v30 = vpop.f32.mrf.mxu0 }
  0xfe   : > { %v946_v11 = vadd.f32 %v917_v29, %v828_v0 }
  0xff   : > { %v2264_v31 = vpop.f32.mrf.mxu1  ;;  %v815_v32 = vpop.f32.mrf.mxu0 }
 0x100   : > { %v951_v16 = vadd.f32 %v2264_v31, %v833_v10 }
 0x101   : > { %v930_v33 = vpop.f32.mrf.mxu1  ;;  %v2270_v34 = vpop.f32.mrf.mxu0 }
 0x102   : > { %v1065_v61 = vadd.f32 %v2270_v34, %v947_v54  ;;  %v949_v26 = vadd.f32 %v930_v33, %v831_v18 }
 0x103   : > { %v2873_v35 = vpop.f32.mrf.mxu1  ;;  %v1032_v36 = vpop.f32.mrf.mxu0 }
 0x104   : > { %v1063_v5 = vadd.f32 %v1032_v36, %v945_v57 }
 0x105   : > { %v2271_v37 = vpop.f32.mrf.mxu0  ;;  %v2875_v39 = vpop.f32.mrf.mxu1 }
 0x106   : > { %v1066_v43 = vadd.f32 %v2271_v37, %v948_v62  ;;  %v834_v37 = vadd.f32 %v2255_v30, %v599_v20  ;;  %v2891_v30 = vld [vmem:[%s3036_s5] ss:$0 sm:$0xff] }
 0x107   : > { %v1035_v27 = vpop.f32.mrf.mxu0  ;;  %v2280_v41 = vpop.f32.mrf.mxu1 }
 0x108   : > { %v1295_v8 = vadd.f32 %v2280_v41, %v1065_v61  ;;  %v1064_v17 = vadd.f32 %v1035_v27, %v946_v11  ;;  %v832_v41 = vadd.f32 %v815_v32, %v591_v3  ;;  %v952_v31 = vadd.f32 %v2873_v35, %v834_v37 }
 0x109   : > { %v2274_v40 = vpop.f32.mrf.mxu0  ;;  %v1262_v44 = vpop.f32.mrf.mxu1 }
 0x10a   : > { %v1293_v13 = vadd.f32 %v1262_v44, %v1063_v5  ;;  %v1069_v44 = vadd.f32 %v2274_v40, %v951_v16  ;;  %v950_v33 = vadd.f32 %v2875_v39, %v832_v41 }
 0x10b   : > { %v1048_v42 = vpop.f32.mrf.mxu0  ;;  %v2281_v46 = vpop.f32.mrf.mxu1 }
 0x10c   : > { %v1296_v22 = vadd.f32 %v2281_v46, %v1066_v43  ;;  %v1067_v21 = vadd.f32 %v1048_v42, %v949_v26 }
 0x10d   : > { %v2877_v45 = vpop.f32.mrf.mxu0  ;;  %v1265_v51 = vpop.f32.mrf.mxu1 }
 0x10e   : > { %v1294_v28 = vadd.f32 %v1265_v51, %v1064_v17  ;;  %v1070_v39 = vadd.f32 %v2877_v45, %v952_v31 }
 0x10f   : > { %v2879_v48 = vpop.f32.mrf.mxu0  ;;  %v2284_v58 = vpop.f32.mrf.mxu1 }
 0x110   : > { %v1299_v27 = vadd.f32 %v2284_v58, %v1069_v44  ;;  %v1068_v53 = vadd.f32 %v2879_v48, %v950_v33 }
 0x111   : > { %v2290_v52 = vpop.f32.mrf.mxu0  ;;  %v1278_v63 = vpop.f32.mrf.mxu1 }
 0x112   : > { %v1414_v24 = vadd.f32 %v2290_v52, %v1295_v8  ;;  %v1297_v50 = vadd.f32 %v1278_v63, %v1067_v21 }
 0x113   : > { %v1381_v55 = vpop.f32.mrf.mxu0  ;;  %v2285_v9 = vpop.f32.mrf.mxu1 }
 0x114   : > { %v1412_v25 = vadd.f32 %v1381_v55, %v1293_v13  ;;  %v1300_v61 = vadd.f32 %v2285_v9, %v1070_v39 }
 0x115   : > { %v2291_v60 = vpop.f32.mrf.mxu0  ;;  %v1281_v15 = vpop.f32.mrf.mxu1 }
 0x116   : > { %v1415_v6 = vadd.f32 %v2291_v60, %v1296_v22  ;;  %v1298_v62 = vadd.f32 %v1281_v15, %v1068_v53 }
 0x117   : > { %v1384_v2 = vpop.f32.mrf.mxu0  ;;  %v2300_v4 = vpop.f32.mrf.mxu1 }
 0x118   : > { %v1533_v29 = vadd.f32 %v2300_v4, %v1414_v24  ;;  %v1413_v49 = vadd.f32 %v1384_v2, %v1294_v28 }
 0x119   : > { %v2294_v12 = vpop.f32.mrf.mxu0  ;;  %v1500_v36 = vpop.f32.mrf.mxu1 }
 0x11a   : > { %v1531_v19 = vadd.f32 %v1500_v36, %v1412_v25  ;;  %v1418_v54 = vadd.f32 %v2294_v12, %v1299_v27 }
 0x11b   : > { %v1397_v23 = vpop.f32.mrf.mxu0  ;;  %v2301_v7 = vpop.f32.mrf.mxu1 }
 0x11c   : > { %v1534_v40 = vadd.f32 %v2301_v7, %v1415_v6  ;;  %v1416_v60 = vadd.f32 %v1397_v23, %v1297_v50 }
 0x11d   : > { %v2295_v34 = vpop.f32.mrf.mxu0  ;;  %v1503_v47 = vpop.f32.mrf.mxu1 }
 0x11e   : > { %v1532_v55 = vadd.f32 %v1503_v47, %v1413_v49  ;;  %v1419_v11 = vadd.f32 %v2295_v34, %v1300_v61 }
 0x11f   : > { %v1400_v14 = vpop.f32.mrf.mxu0  ;;  %v2304_v35 = vpop.f32.mrf.mxu1 }
 0x120   : > { %v1537_v0 = vadd.f32 %v2304_v35, %v1418_v54  ;;  %v1417_v15 = vadd.f32 %v1400_v14, %v1298_v62 }
 0x121   : > { %v2310_v46 = vpop.f32.mrf.mxu0  ;;  %v1516_v59 = vpop.f32.mrf.mxu1 }
 0x122   : > { %v1763_v32 = vadd.f32 %v2310_v46, %v1533_v29  ;;  %v1535_v9 = vadd.f32 %v1516_v59, %v1416_v60 }
 0x123   : > { %v1730_v51 = vpop.f32.mrf.mxu0  ;;  %v2305_v48 = vpop.f32.mrf.mxu1 }
 0x124   : > { %v1778_v42 = vadd.f32 %v2891_v30, %v1763_v32  ;;  %v1761_v52 = vadd.f32 %v1730_v51, %v1531_v19  ;;  %v1538_v23 = vadd.f32 %v2305_v48, %v1419_v11 }
 0x125   : > { %v2311_v38 = vpop.f32.mrf.mxu0  ;;  %v1519_v13 = vpop.f32.mrf.mxu1 }
 0x126   : > { %vm1786_vm5 = vcmp.ge.f32.partialorder %v1778_v42, 0.0  ;;  %v1794_v56 = vmul.f32 0.01, %v1778_v42  ;;  %v1776_v57 = vadd.f32 %v2891_v30, %v1761_v52  ;;  %v1764_v58 = vadd.f32 %v2311_v38, %v1534_v40 }
 0x127   : > { %v1733_v63 = vpop.f32.mrf.mxu0  ;;  %v1536_v4 = vadd.f32 %v1519_v13, %v1417_v15 }
 0x128   : > { %v1802_v1 = vsel %vm1786_vm5, %v1778_v42, %v1794_v56  ;;  %vm1784_vm6 = vcmp.ge.f32.partialorder %v1776_v57, 0.0  ;;  %v1792_v2 = vmul.f32 0.01, %v1776_v57  ;;  %v1779_v45 = vadd.f32 %v2891_v30, %v1764_v58 }
 0x129   : > { %v1762_v5 = vadd.f32 %v1733_v63, %v1532_v55  ;;  %1810 = vst [vmem:[%s2899_s19 + $0x10] sm:$0xff] %v1802_v1  ;;  %v2314_v43 = vpop.f32.mrf.mxu0  ;;  %v1832_v37 = vmul.f32 %v1802_v1, %v1802_v1 }
 0x12a   : > { %v1800_v8 = vsel %vm1784_vm6, %v1776_v57, %v1792_v2  ;;  %vm1787_vm7 = vcmp.ge.f32.partialorder %v1779_v45, 0.0  ;;  %v1795_v10 = vmul.f32 0.01, %v1779_v45  ;;  %v1767_v20 = vadd.f32 %v2314_v43, %v1537_v0 }
 0x12b   : > { %v1777_v12 = vadd.f32 %v2891_v30, %v1762_v5  ;;  %1808 = vst [vmem:[%s2899_s19] sm:$0xff] %v1800_v8  ;;  %v1746_v16 = vpop.f32.mrf.mxu0  ;;  %v1830_v17 = vmul.f32 %v1800_v8, %v1800_v8 }
 0x12c   : > { %v1803_v18 = vsel %vm1787_vm7, %v1779_v45, %v1795_v10  ;;  %v1782_v24 = vadd.f32 %v2891_v30, %v1767_v20  ;;  %v1765_v22 = vadd.f32 %v1746_v16, %v1535_v9 }
 0x12d   : > { %vm1785_vm8 = vcmp.ge.f32.partialorder %v1777_v12, 0.0  ;;  %v1793_v3 = vmul.f32 0.01, %v1777_v12  ;;  %1811 = vst [vmem:[%s2899_s19 + $0x18] sm:$0xff] %v1803_v18  ;;  %v2315_v34 = vpop.f32.mrf.mxu0  ;;  %v1833_v33 = vmul.f32 %v1803_v18, %v1803_v18 }
 0x12e   : > { %vm1790_vm9 = vcmp.ge.f32.partialorder %v1782_v24, 0.0  ;;  %v1798_v36 = vmul.f32 0.01, %v1782_v24  ;;  %v1780_v41 = vadd.f32 %v2891_v30, %v1765_v22  ;;  %v1768_v44 = vadd.f32 %v2315_v34, %v1538_v23 }
 0x12f   : > { %v1801_v26 = vsel %vm1785_vm8, %v1777_v12, %v1793_v3  ;;  %v1749_v28 = vpop.f32.mrf.mxu0 }
 0x130   : > { %v1816_v25 = vadd.f32 %v1801_v26, %v1800_v8  ;;  %v1831_v29 = vmul.f32 %v1801_v26, %v1801_v26  ;;  %1809 = vst [vmem:[%s2899_s19 + $0x8] sm:$0xff] %v1801_v26  ;;  %v1806_v19 = vsel %vm1790_vm9, %v1782_v24, %v1798_v36  ;;  %v1766_v7 = vadd.f32 %v1749_v28, %v1536_v4 }
 0x131   : > { %vm1788_vm10 = vcmp.ge.f32.partialorder %v1780_v41, 0.0  ;;  %v1796_v21 = vmul.f32 0.01, %v1780_v41  ;;  %v1783_v31 = vadd.f32 %v2891_v30, %v1768_v44  ;;  %1814 = vst [vmem:[%s2899_s19 + $0x30] sm:$0xff] %v1806_v19 }
 0x132   : > { %v1817_v14 = vadd.f32 %v1816_v25, %v1802_v1  ;;  %v1838_v6 = vadd.f32 %v1831_v29, %v1830_v17  ;;  %v1781_v32 = vadd.f32 %v2891_v30, %v1766_v7 }
 0x133   : > { %v1804_v40 = vsel %vm1788_vm10, %v1780_v41, %v1796_v21  ;;  %vm1791_vm11 = vcmp.ge.f32.partialorder %v1783_v31, 0.0  ;;  %v1799_v47 = vmul.f32 0.01, %v1783_v31 }
 0x134   : > { %v1839_v27 = vadd.f32 %v1838_v6, %v1832_v37  ;;  %v1818_v46 = vadd.f32 %v1817_v14, %v1803_v18  ;;  %v1834_v50 = vmul.f32 %v1804_v40, %v1804_v40  ;;  %vm1789_vm12 = vcmp.ge.f32.partialorder %v1781_v32, 0.0  ;;  %1812 = vst [vmem:[%s2899_s19 + $0x20] sm:$0xff] %v1804_v40 }
 0x135   : > { %v1807_v42 = vsel %vm1791_vm11, %v1783_v31, %v1799_v47  ;;  %v1797_v52 = vmul.f32 0.01, %v1781_v32 }
 0x136   : > { %v1819_v49 = vadd.f32 %v1818_v46, %v1804_v40  ;;  %v1840_v51 = vadd.f32 %v1839_v27, %v1833_v33  ;;  %1815 = vst [vmem:[%s2899_s19 + $0x38] sm:$0xff] %v1807_v42 }
 0x137   : > { %v1805_v35 = vsel %vm1789_vm12, %v1781_v32, %v1797_v52 }
 0x138   : > { %v1841_v30 = vadd.f32 %v1840_v51, %v1834_v50  ;;  %v1820_v39 = vadd.f32 %v1819_v49, %v1805_v35  ;;  %v1835_v53 = vmul.f32 %v1805_v35, %v1805_v35  ;;  %1813 = vst [vmem:[%s2899_s19 + $0x28] sm:$0xff] %v1805_v35 }
 0x139   : > { %2417 = shalt.err (!%p2414_p3)
}
 0x13a   : > { %s2418_s19 = scalar_lea.hbm %s2920_s26, 1024  ;;  %s2422_s25 = scalar_lea.hbm %s3037_s6, 2048 }
 0x13b   : > { %p2419_p4 = scmp.ne.s32.totalorder %s2920_s26, %s2418_s19  ;;  %p2423_p9 = scmp.lt.s32.totalorder %s2920_s26, %s3037_s6 }
 0x13c   : > { %p2424_p10 = scmp.lt.s32.totalorder %s2422_s25, %s2418_s19 }
 0x13d   : > { %p2420_p7 = pnand %p2419_p4, %p2612_p5 }
 0x13e   : > { %p2425_p11 = por %p2424_p10, %p2423_p9 }
 0x13f   : > { %p2421_p8 = pneg %p2420_p7 }
 0x141   : > { %p2426_p12 = pnand %p2425_p11, %p2421_p8 }
 0x143   : > { %2429 = shalt.err (!%p2426_p12)
}
 0x144   : > { %s2523_s13 = smov 128   ;;  %s2524_s17 = smov 8   ;;  %v1836_v54 = vmul.f32 %v1806_v19, %v1806_v19  ;;  %v1821_v38 = vadd.f32 %v1820_v39, %v1806_v19  ;;  %v1842_v55 = vadd.f32 %v1841_v30, %v1835_v53  ;;  %v1837_v56 = vmul.f32 %v1807_v42, %v1807_v42 }
 0x145   : > { %2329 = dma.vmem_to_hbm [thread:$0]  (%p2612_p5), %s2914_s20, 1024, %s2920_s26, %s1853_s24, %s2523_s13, %s2523_s13, %s2524_s17  }
 0x146   : > { %v1843_v57 = vadd.f32 %v1842_v55, %v1836_v54  ;;  %v1822_v58 = vadd.f32 %v1821_v38, %v1807_v42  ;;  %s1857_s10 = sand.u32 1, %s2593_s9   ;;  %s2176_s20 = sshll.u32 %s2593_s9, 4 }
 0x147   : > { %s353_s26 = scalar_lea.vmem [#allocation4], %s2884_s12  ;;  %s3041_s18 = scalar_lea.vmem [#allocation6], %s2884_s12 }
 0x148   : > { %v1823_v59 = vrot.slane %v1822_v58, 4  ;;  %v1844_v60 = vadd.f32 %v1843_v57, %v1837_v56  ;;  %s1890_s24 = sshll.u32 %s353_s26, 4  ;;  %s1903_s19 = sshll.u32 %s3041_s18, 4  ;;  %s2957_s24 = int_to_ptr.vmem [resolvable:$true] %s1890_s24  ;;  %s2964_s19 = int_to_ptr.vmem [resolvable:$true] %s1903_s19 }
 0x149   : > { %s2955_s25 = scalar_lea.hbm %s3038_s7, %s2176_s20  ;;  %s2962_s13 = scalar_lea.hbm %s3039_s8, %s2176_s20 }
 0x14a   : > { %v1824_v61 = vadd.f32 %v1823_v59, %v1822_v58  ;;  %v1845_v62 = vrot.slane %v1844_v60, 4  ;;  %s2966_s17 = scalar_lea.sflag [#allocation5], %s1857_s10  ;;  %s2430_s21 = scalar_lea.vmem %s2957_s24, 16 }
 0x14b   : > { %p2431_p13 = scmp.ne.s32.totalorder %s2957_s24, %s2430_s21  ;;  %s2525_s23 = smov [#allocation4]  }
 0x14c   : > { %v1825_v63 = vrot.slane %v1824_v61, 2  ;;  %v1846_v0 = vadd.f32 %v1845_v62, %v1844_v60  ;;  %s2434_s18 = sshll.u32 %s2525_s23, 4  ;;  %s2435_s18 = int_to_ptr.vmem [resolvable:$false] %s2434_s18 }
 0x14d   : > { %p2432_p0 = pnand %p2431_p13, %p2612_p5  ;;  %s2436_s0 = scalar_lea.vmem %s2435_s18, 32 }
 0x14e   : > { %v1826_v1 = vadd.f32 %v1825_v63, %v1824_v61  ;;  %v1847_v2 = vrot.slane %v1846_v0, 2  ;;  %p2437_p2 = scmp.lt.s32.totalorder %s2957_s24, %s2435_s18  ;;  %p2438_p3 = scmp.lt.s32.totalorder %s2436_s0, %s2430_s21 }
 0x14f   : > { %p2433_p1 = pneg %p2432_p0 }
 0x150   : > { %v1827_v45 = vrot.slane %v1826_v1, 1  ;;  %v1848_v48 = vadd.f32 %v1847_v2, %v1846_v0  ;;  %p2439_p4 = por %p2438_p3, %p2437_p2 }
 0x152   : > { %v1828_v5 = vadd.f32 %v1827_v45, %v1826_v1  ;;  %v1849_v8 = vrot.slane %v1848_v48, 1  ;;  %p2440_p7 = pnand %p2439_p4, %p2433_p1 }
 0x154   : > { %1829 = vst [vmem:[%s353_s26] sm:$0x1] %v1828_v5  ;;  %v1850_v10 = vadd.f32 %v1849_v8, %v1848_v48 }
 0x155   : > { %2443 = shalt.err (!%p2440_p7)
}
 0x156   : > { %s2444_s10 = scalar_lea.hbm %s2955_s25, 16  ;;  %s2448_s9 = scalar_lea.hbm %s3038_s7, 32 }
 0x157   : > { %p2445_p8 = scmp.ne.s32.totalorder %s2955_s25, %s2444_s10  ;;  %p2449_p11 = scmp.lt.s32.totalorder %s2955_s25, %s3038_s7 }
 0x158   : > { %p2450_p12 = scmp.lt.s32.totalorder %s2448_s9, %s2444_s10 }
 0x159   : > { %p2446_p9 = pnand %p2445_p8, %p2612_p5 }
 0x15a   : > { %p2451_p13 = por %p2450_p12, %p2449_p11 }
 0x15b   : > { %p2447_p10 = pneg %p2446_p9 }
 0x15d   : > { %p2452_p0 = pnand %p2451_p13, %p2447_p10 }
 0x15f   : > { %2455 = shalt.err (!%p2452_p0)
}
 0x160   : > { %2330 = dma.vmem_to_hbm [thread:$0]  (%p2612_p5), %s2957_s24, 16, %s2955_s25, %s2966_s17  }
 0x161   : > { %s3048_s0 = scalar_lea.vmem [#allocation6], %s2884_s12  ;;  %s2456_s18 = scalar_lea.vmem %s2964_s19, 16 }
 0x162   : > { %1851 = vst [vmem:[%s3048_s0] sm:$0x1] %v1850_v10  ;;  %p2457_p1 = scmp.ne.s32.totalorder %s2964_s19, %s2456_s18  ;;  %s2526_s21 = smov [#allocation6]  }
 0x163   : > { %s2460_s10 = sshll.u32 %s2526_s21, 4  ;;  %s2461_s10 = int_to_ptr.vmem [resolvable:$false] %s2460_s10 }
 0x164   : > { %p2458_p2 = pnand %p2457_p1, %p2612_p5  ;;  %s2462_s20 = scalar_lea.vmem %s2461_s10, 32 }
 0x165   : > { %p2463_p4 = scmp.lt.s32.totalorder %s2964_s19, %s2461_s10  ;;  %p2464_p7 = scmp.lt.s32.totalorder %s2462_s20, %s2456_s18 }
 0x166   : > { %p2459_p3 = pneg %p2458_p2 }
 0x167   : > { %p2465_p8 = por %p2464_p7, %p2463_p4 }
 0x169   : > { %p2466_p9 = pnand %p2465_p8, %p2459_p3 }
 0x16b   : > { %2469 = shalt.err (!%p2466_p9)
}
 0x16c   : > { %s2470_s12 = scalar_lea.hbm %s2962_s13, 16  ;;  %s2474_s26 = scalar_lea.hbm %s3039_s8, 32 }
 0x16d   : > { %p2471_p10 = scmp.ne.s32.totalorder %s2962_s13, %s2470_s12  ;;  %p2475_p13 = scmp.lt.s32.totalorder %s2962_s13, %s3039_s8 }
 0x16e   : > { %p2476_p0 = scmp.lt.s32.totalorder %s2474_s26, %s2470_s12 }
 0x16f   : > { %p2472_p11 = pnand %p2471_p10, %p2612_p5 }
 0x170   : > { %p2477_p1 = por %p2476_p0, %p2475_p13 }
 0x171   : > { %p2473_p12 = pneg %p2472_p11 }
 0x173   : > { %p2478_p2 = pnand %p2477_p1, %p2473_p12 }
 0x175   : > { %2481 = shalt.err (!%p2478_p2)
}
 0x176   : > { %2331 = dma.vmem_to_hbm [thread:$0]  (%p2612_p5), %s2964_s19, 16, %s2962_s13, %s2966_s17  }
 0x177 PF: > { %p2345_p3 = scmp.ge.s32.totalorder %s2520_s30, 2  ;;  %s1915_s23 = sand.u32 1, %s2508_s27  }
 0x178   : > { %s1916_s0 = scalar_lea.sflag [#allocation3], %s1915_s23 }
 0x179   : > { %p2336_p4 = pnand %p2345_p3, %p2616_p6 }
 0x17b   : > { %p2337_p7 = pneg %p2336_p4 }
 0x17d   : > { %2499 = dma.done.wait (%p2337_p7), %s1916_s0, 1024  }
 0x17e   : > { %2501 = vsyncadd (%p2337_p7), %s1916_s0, 4294966272  ;;  %s3049_s18 = sadd.s32 4294967294, %s2520_s30  }
 0x17f   : > { %s1924_s21 = sand.u32 1, %s3049_s18  }
 0x180   : > { %s1925_s15 = scalar_lea.sflag [#allocation5], %s1924_s21 }
 0x181   : > { %2503 = dma.done.wait (%p2337_p7), %s1925_s15, 32  }
 0x182   : > { %2505 = vsyncadd (%p2337_p7), %s1925_s15, 4294967264  ;;  %p22_p5 = scmp.ge.s32.totalorder %s2597_s11, 4   ;;  %s3050_s27 = smov %s2512_s28 }
 0x183   : > { %s3051_s28 = smov %s2516_s29  ;;  %s3052_s29 = smov %s2610_s14 }
 0x184   : > { %s3053_s30 = smov %s2597_s11  ;;  %24 = sbr.rel (!%p22_p5) target bundleno = 7 (0x7), region = 130 }
 0x189   :  { %1937 = vsyncpa [#allocation3], 1 }
 0x18a   :  { %1939 = vsyncpa [#allocation3 + $0x1], 1 }
 0x18b   :  { %1940 = vsyncpa [#allocation5], 1 }
 0x18c   :  { %1942 = vsyncpa [#allocation5 + $0x1], 1 }

</bundles_post_ra>
